<compile_context>
chip_gen: v7x
topology: tpu7x:2x2x1
jax: 0.10.0
libtpu: 0.0.40
codegen_flags: <defaults>
</compile_context>

<pallas_src>
import jax
import jax.numpy as jnp
from jax import lax
from jax.experimental import pallas as pl
from jax.experimental.pallas import tpu as pltpu


_LANE = 128
_SUBLANE = 8
# Conservative cap that fits v7x's 64 MiB/TC VMEM; raise toward ~100 MiB on v5e/v6e when
# growing tiles to 256.
_VMEM_CAP_BYTES = 56 * 1024 * 1024


def _round_up(x, m):
    return (x + m - 1) // m * m


def _pick_tile(n, cap, lane=False):
    """Largest tile t <= cap with n % t == 0 that satisfies the (8,128) layout rule for
    the dimension it will occupy (multiple of 8 for sublane-ish dims, multiple of 128 for
    dims that land in the lane position of a 2-D block).  Falls back to the full extent
    (always legal, possibly VMEM-hungry) when no such divisor exists."""
    if n <= cap:
        return n
    step = _LANE if lane else _SUBLANE
    t = (cap // step) * step
    while t >= step:
        if n % t == 0:
            return t
        t -= step
    return n


def _vmem_limit(pipelined_bytes, temp_bytes):
    """Explicit VMEM budget: double-buffered pipeline + in-kernel temporaries + headroom,
    clamped to a cap that is safe on every generation (v7x has 64 MiB per TensorCore)."""
    need = 2 * pipelined_bytes + temp_bytes + 4 * 1024 * 1024
    return int(min(max(need, 32 * 1024 * 1024), _VMEM_CAP_BYTES))


# ---------------------------------------------------------------------------
# One-off relation normalization + per-layer attention contraction precompute.
# ---------------------------------------------------------------------------
def _rel_precompute_kernel(rel_ref, attn_ref, rels_out_ref, an_out_ref, ar_out_ref):
    """L2-normalize the per-edge relation vectors (F.normalize semantics, eps = 1e-12),
    emit them in bf16 for streaming, and precompute — for every layer — the attention
    contractions <rels, a_neigh> and <rels, a_rel> so the per-layer kernel never has to
    re-read the [TM, TK, D] tile for them."""
    rel = rel_ref[...].astype(jnp.float32)                         # [TM, TK, Dp]
    ss = jnp.sum(rel * rel, axis=-1, keepdims=True)                # [TM, TK, 1]
    # rsqrt(max(ss, eps^2)) == 1 / max(||r||, eps)  (eps = 1e-12, as in F.normalize).
    # rsqrt runs on the EUP slot instead of sqrt + VPU divide.
    inv = lax.rsqrt(jnp.maximum(ss, jnp.float32(1e-24)))
    rels_bf = (rel * inv).astype(jnp.bfloat16)                     # storage precision
    rels_out_ref[...] = rels_bf

    attn = attn_ref[...].astype(jnp.float32)                       # [L, 3, Dp]
    rels_q = rels_bf.astype(jnp.float32)   # exactly the values the layer kernels stream
    num_layers = an_out_ref.shape[0]
    for l in range(num_layers):            # static unroll; depth is small
        a_neigh = attn[l, 1:2, :]                                  # [1, Dp]
        a_rel = attn[l, 2:3, :]                                    # [1, Dp]
        an_out_ref[l] = jnp.sum(rels_q * a_neigh[None, :, :], axis=-1)   # [TM, TK]
        ar_out_ref[l] = jnp.sum(rels_q * a_rel[None, :, :], axis=-1)     # [TM, TK]


def rel_precompute(rel_dense, attn_all):
    """2-D tiled streaming pass over the dense per-edge relation tensor."""
    n_dst, n_src, dp = rel_dense.shape
    num_layers = attn_all.shape[0]
    tm = _pick_tile(n_dst, 64)                      # modest dst tile: pure streaming
    tk = _pick_tile(n_src, _LANE, lane=True)
    grid = (n_dst // tm, n_src // tk)

    block = tm * tk
    pipelined = (block * dp * 4                     # rel_dense f32 in
                 + block * dp * 2                   # rels bf16 out
                 + 2 * num_layers * block * 4       # an / ar f32 out
                 + num_layers * 3 * dp * 4)         # attention kernels
    temps = 3 * block * dp * 4                      # f32 upcast / normalized / products

    return pl.pallas_call(
        _rel_precompute_kernel,
        out_shape=(
            jax.ShapeDtypeStruct((n_dst, n_src, dp), jnp.bfloat16),
            jax.ShapeDtypeStruct((num_layers, n_dst, n_src), jnp.float32),
            jax.ShapeDtypeStruct((num_layers, n_dst, n_src), jnp.float32),
        ),
        grid_spec=pltpu.PrefetchScalarGridSpec(
            num_scalar_prefetch=0,
            grid=grid,
            in_specs=[
                pl.BlockSpec((tm, tk, dp), lambda i, k: (i, k, 0)),        # rel_dense
                pl.BlockSpec((num_layers, 3, dp), lambda i, k: (0, 0, 0)),  # attn (all layers)
            ],
            out_specs=[
                pl.BlockSpec((tm, tk, dp), lambda i, k: (i, k, 0)),         # bf16 rels
                pl.BlockSpec((num_layers, tm, tk), lambda i, k: (0, i, k)),  # <rels, a_neigh>
                pl.BlockSpec((num_layers, tm, tk), lambda i, k: (0, i, k)),  # <rels, a_rel>
            ],
        ),
        compiler_params=pltpu.CompilerParams(
            dimension_semantics=("parallel", "parallel"),
            vmem_limit_bytes=_vmem_limit(pipelined, temps),
        ),
    )(rel_dense, attn_all)


# ---------------------------------------------------------------------------
# One RREA graph-attention layer: dst tiles x src tiles with online softmax.
# ---------------------------------------------------------------------------
def _rrea_layer_kernel(f_dst_ref, f_src_ref, rels_ref, an_ref, ar_ref, adj_ref, attn_ref,
                       out_ref, m_sc, l_sc, self_sc, acc_sc):
    """
    f_dst_ref : [TM, Dp]      dst-node features of this dst tile (already activated)
    f_src_ref : [TK, Dp]      src-node features of this src chunk
    rels_ref  : [TM, TK, Dp]  pre-normalized per-edge relation vectors (bf16 stream)
    an_ref    : [TM, TK]      precomputed <rels, a_neigh>
    ar_ref    : [TM, TK]      precomputed <rels, a_rel>
    adj_ref   : [TM, TK]      adjacency mask (1.0 = edge src j -> dst i)
    attn_ref  : [3, Dp]       attention kernel reshaped from (3*D, 1), D-padded
    out_ref   : [TM, Dp]      tanh( sum_j att_ij * reflected_neigh_ij )
    scratch   : m_sc/l_sc/self_sc [TM,1], acc_sc [TM,Dp]  (online-softmax state)
    """
    k = pl.program_id(1)
    attn = attn_ref[...].astype(jnp.float32)                       # [3, Dp] (tiny)

    @pl.when(k == 0)
    def _():
        m_sc[...] = jnp.full_like(m_sc, jnp.float32(-1e30))
        l_sc[...] = jnp.zeros_like(l_sc)
        acc_sc[...] = jnp.zeros_like(acc_sc)
        # logit_self depends only on the dst tile: hoisted out of the src loop.
        f_dst = f_dst_ref[...].astype(jnp.float32)                 # [TM, Dp]
        self_sc[...] = jnp.sum(f_dst * attn[0:1, :], axis=-1, keepdims=True)

    f_src = f_src_ref[...].astype(jnp.float32)                     # [TK, Dp]
    rels = rels_ref[...].astype(jnp.float32)                       # [TM, TK, Dp] (f32 math)
    adj = adj_ref[...].astype(jnp.float32)                         # [TM, TK]
    rels_an = an_ref[...]                                          # [TM, TK]
    rels_ar = ar_ref[...]                                          # [TM, TK]
    a_neigh = attn[1:2, :]                                         # [1, Dp]

    # Householder reflection, never materialized:
    #   neighs_ij = f_src_j - 2 * dot_ij * rels_ij,   dot_ij = <f_src_j, rels_ij>
    dot = jnp.sum(f_src[None, :, :] * rels, axis=-1)                          # [TM, TK]

    # Attention logits of cat([selfs, neighs, rels]) @ attention_kernel, expanded:
    fs_an = jnp.sum(f_src[None, :, :] * a_neigh[None, :, :], axis=-1)         # [1, TK]
    logits = self_sc[...] + fs_an + rels_ar - 2.0 * dot * rels_an             # [TM, TK]

    # edge_softmax(norm_by='dst') over this src chunk, accumulated online.
    masked = jnp.where(adj > 0, logits, jnp.float32(-1e30))
    m_prev = m_sc[...]
    m_new = jnp.maximum(m_prev, jnp.max(masked, axis=-1, keepdims=True))      # [TM, 1]
    alpha = jnp.exp(m_prev - m_new)                                           # [TM, 1]
    p = jnp.exp(masked - m_new) * adj                                         # [TM, TK]
    l_sc[...] = alpha * l_sc[...] + jnp.sum(p, axis=-1, keepdims=True)
    m_sc[...] = m_new

    # Weighted aggregation with the reflection expanded:
    #   sum_j p_ij * neighs_ij = p @ f_src  -  2 * sum_j (p_ij * dot_ij) * rels_ij
    pf = jnp.dot(p, f_src, preferred_element_type=jnp.float32)                # MXU [TM, Dp]
    corr = jnp.sum((p * dot)[:, :, None] * rels, axis=1)                      # [TM, Dp]
    acc_sc[...] = alpha * acc_sc[...] + pf - 2.0 * corr

    @pl.when(k == pl.num_programs(1) - 1)
    def _():
        # Guard against zero in-degree rows (denominator 0 -> NaN in the PyTorch ref).
        inv_l = pl.reciprocal(jnp.maximum(l_sc[...], jnp.float32(1e-30)))     # exact
        out_ref[...] = jnp.tanh(acc_sc[...] * inv_l).astype(out_ref.dtype)


def rrea_layer(features, rels_bf16, an_all, ar_all, adj, attn_rows, *, layer,
               tile_m=None, tile_k=None):
    """One RREA layer over the dense graph via pallas_call (dst x src grid)."""
    n, dp = features.shape
    if tile_m is None:
        tile_m = _pick_tile(n, _LANE)
    if tile_k is None:
        tile_k = _pick_tile(n, _LANE, lane=True)
    assert n % tile_m == 0 and n % tile_k == 0
    grid = (n // tile_m, n // tile_k)

    pipelined = (tile_m * dp * 4                  # f_dst
                 + tile_k * dp * 4                # f_src
                 + tile_m * tile_k * dp * 2       # bf16 rels (dominant stream)
                 + 3 * tile_m * tile_k * 4        # an / ar / adj
                 + 3 * dp * 4                     # attention rows
                 + tile_m * dp * 4)               # output
    temps = 3 * tile_m * tile_k * dp * 4          # f32 upcast of rels + two products

    return pl.pallas_call(
        _rrea_layer_kernel,
        out_shape=jax.ShapeDtypeStruct((n, dp), features.dtype),
        grid_spec=pltpu.PrefetchScalarGridSpec(
            num_scalar_prefetch=0,
            grid=grid,
            in_specs=[
                pl.BlockSpec((tile_m, dp), lambda i, k: (i, 0)),                    # dst feats
                pl.BlockSpec((tile_k, dp), lambda i, k: (k, 0)),                    # src chunk
                pl.BlockSpec((tile_m, tile_k, dp), lambda i, k: (i, k, 0)),         # bf16 rels
                pl.BlockSpec((None, tile_m, tile_k), lambda i, k: (layer, i, k)),   # <rels,a_n>
                pl.BlockSpec((None, tile_m, tile_k), lambda i, k: (layer, i, k)),   # <rels,a_r>
                pl.BlockSpec((tile_m, tile_k), lambda i, k: (i, k)),                # adjacency
                pl.BlockSpec((3, dp), lambda i, k: (0, 0)),                         # attention
            ],
            out_specs=pl.BlockSpec((tile_m, dp), lambda i, k: (i, 0)),
            scratch_shapes=[
                pltpu.VMEM((tile_m, 1), jnp.float32),    # running max
                pltpu.VMEM((tile_m, 1), jnp.float32),    # running denom
                pltpu.VMEM((tile_m, 1), jnp.float32),    # hoisted <f_dst, a_self>
                pltpu.VMEM((tile_m, dp), jnp.float32),   # unnormalized accumulator
            ],
        ),
        compiler_params=pltpu.CompilerParams(
            # dst axis: "parallel" (megacore / v7x dual-TC sharding).
            # src axis: MUST stay innermost "arbitrary" — the online-softmax state
            # (m_sc, l_sc, acc_sc) is carried across it.
            dimension_semantics=("parallel", "arbitrary"),
            vmem_limit_bytes=_vmem_limit(pipelined, temps),
        ),
    )(features, features, rels_bf16, an_all, ar_all, adj, attn_rows)


def rrea_forward(features, rel_dense, adj, attn_kernels, *, tile_m=None, tile_k=None):
    """RREA.forward: tanh -> depth x (relational graph attention + tanh) -> concat."""
    n, d = features.shape
    num_layers = len(attn_kernels)
    dp = _round_up(d, _LANE)   # lane-dense feature dim; zero-padding is mathematically exact
    pad_d = dp - d

    feats_p = jnp.pad(features, ((0, 0), (0, pad_d))) if pad_d else features
    rel_p = jnp.pad(rel_dense, ((0, 0), (0, 0), (0, pad_d))) if pad_d else rel_dense
    attn_all = jnp.stack([
        jnp.pad(ak.reshape(3, d), ((0, 0), (0, pad_d))) if pad_d else ak.reshape(3, d)
        for ak in attn_kernels
    ]).astype(jnp.float32)                                           # [L, 3, Dp]

    # Relation normalization + per-layer attention contractions are identical for every
    # layer -> compute once, outside the depth loop, tiled 2-D over (dst, src).
    rels_bf16, an_all, ar_all = rel_precompute(rel_p, attn_all)

    f = jnp.tanh(feats_p)               # features = self.activation(features)
    outputs = [f[:, :d]]                # outputs.append(features[:len(dst_nodes)])
    for l in range(num_layers):
        f = rrea_layer(f, rels_bf16, an_all, ar_all, adj, attn_all[l],
                       layer=l, tile_m=tile_m, tile_k=tile_k)
        outputs.append(f[:, :d])
    return jnp.concatenate(outputs, axis=1)      # [N, D * (depth + 1)]


# ---------------------------------------------------------------------------
# Pure-JAX reference (mirrors the PyTorch semantics) for the correctness check.
# Relations are quantized to bf16 after L2 normalization to mirror the kernel's
# storage precision for the dominant relation stream.
# ---------------------------------------------------------------------------
def _rrea_forward_ref(features, rel_dense, adj, attn_kernels):
    norm = jnp.sqrt(jnp.sum(rel_dense ** 2, axis=-1, keepdims=True))
    rels = rel_dense / jnp.maximum(norm, 1e-12)                      # F.normalize
    rels = rels.astype(jnp.bfloat16).astype(jnp.float32)             # kernel storage precision
    f = jnp.tanh(features)
    outs = [f]
    for ak in attn_kernels:
        d = f.shape[1]
        a_self, a_neigh, a_rel = ak[:d, 0], ak[d:2 * d, 0], ak[2 * d:, 0]
        neighs0 = f[None, :, :]
        dot = jnp.sum(neighs0 * rels, axis=-1, keepdims=True)
        neighs = neighs0 - 2.0 * dot * rels
        logits = (f @ a_self)[:, None] + neighs @ a_neigh + rels @ a_rel
        masked = jnp.where(adj > 0, logits, -1e30)
        m = jnp.max(masked, axis=-1, keepdims=True)
        p = jnp.exp(masked - m) * adj
        att = p / jnp.sum(p, axis=-1, keepdims=True)
        f = jnp.tanh(jnp.sum(att[:, :, None] * neighs, axis=1))
        outs.append(f)
    return jnp.concatenate(outs, axis=1)


if __name__ == "__main__":
    # Small synthetic problem consistent with RREA(depth=2, node_hidden=D).
    N = 16          # number of nodes (src == dst, full graph)
    D = 32          # node_hidden (padded to 128 lanes internally)
    DEPTH = 2
    REL_SIZE = 8

    key = jax.random.PRNGKey(0)
    k_feat, k_rel, k_att = jax.random.split(key, 3)

    # ent feature (post graph mean-pool in overAllRREA) -- synthetic input features.
    features = jax.random.uniform(k_feat, (N, D), jnp.float32, -0.5, 0.5)

    # rel_emb initialized uniform(-0.05, 0.05) as in init_emb(..., 'uniform').
    rel_emb = jax.random.uniform(k_rel, (REL_SIZE, D), jnp.float32, -0.05, 0.05)

    # Deterministic dense graph: edge j->i exists iff i==j or (3*i + j) % 5 == 0.
    ii = jnp.arange(N)[:, None]
    jj = jnp.arange(N)[None, :]
    adj = jnp.where((ii == jj) | (((3 * ii + jj) % 5) == 0), 1.0, 0.0).astype(jnp.float32)

    # Dense per-edge relation embedding (mean rel emb per edge in the DGL version):
    # edge (j -> i) carries relation (i + j) % REL_SIZE.
    rel_idx = (ii + jj) % REL_SIZE
    rel_dense = rel_emb[rel_idx]                       # [N, N, D]

    # attn_kernels: depth x init_emb(3*D, 1, init='uniform')
    attn_kernels = [
        jax.random.uniform(jax.random.fold_in(k_att, l), (3 * D, 1),
                           jnp.float32, -0.05, 0.05)
        for l in range(DEPTH)
    ]

    out = rrea_forward(features, rel_dense, adj, attn_kernels)
    out = jax.block_until_ready(out)

    ref = _rrea_forward_ref(features, rel_dense, adj, attn_kernels)
    assert out.shape == (N, D * (DEPTH + 1)), out.shape
    # 2e-3 tolerance covers reduction-order differences on top of the shared bf16
    # relation-storage quantization (both paths quantize identically).
    assert jnp.allclose(out, ref, atol=2e-3, rtol=2e-3), "mismatch vs reference"

    print("KERNEL_OK")
</pallas_src>

<mosaic_0001>
module attributes {stable_mosaic.version = 11 : i64} {
  func.func @_rel_precompute_kernel(%arg0: i32, %arg1: i32, %arg2: memref<16x16x128xf32, #tpu.memory_space<vmem>>, %arg3: memref<2x3x128xf32, #tpu.memory_space<vmem>>, %arg4: memref<16x16x128xbf16, #tpu.memory_space<vmem>>, %arg5: memref<2x16x16xf32, #tpu.memory_space<vmem>>, %arg6: memref<2x16x16xf32, #tpu.memory_space<vmem>>) attributes {dimension_semantics = [#tpu.dimension_semantics<parallel>, #tpu.dimension_semantics<parallel>], iteration_bounds = array<i64: 1, 1>, scalar_prefetch = 0 : i64, scratch_operands = 0 : i64, tpu.core_type = #tpu.core_type<tc>, window_params = [{transform_indices = @transform_0, window_bounds = array<i64: 16, 16, 128>}, {pipeline_mode = #tpu.pipeline_mode<synchronous>, transform_indices = @transform_1, window_bounds = array<i64: 2, 3, 128>}, {transform_indices = @transform_2, window_bounds = array<i64: 16, 16, 128>}, {transform_indices = @transform_3, window_bounds = array<i64: 2, 16, 16>}, {transform_indices = @transform_4, window_bounds = array<i64: 2, 16, 16>}]} {
    %c0 = arith.constant 0 : index
    %c0_0 = arith.constant 0 : index
    %c0_1 = arith.constant 0 : index
    %0 = vector.load %arg2[%c0, %c0_0, %c0_1] : memref<16x16x128xf32, #tpu.memory_space<vmem>>, vector<16x16x128xf32>
    %1 = arith.mulf %0, %0 : vector<16x16x128xf32>
    %cst = arith.constant dense<0.000000e+00> : vector<16x16xf32>
    %2 = vector.multi_reduction <add>, %1, %cst [2] : vector<16x16x128xf32> to vector<16x16xf32>
    %3 = vector.shape_cast %2 : vector<16x16xf32> to vector<16x16x1xf32>
    %cst_2 = arith.constant 1.000000e-24 : f32
    %4 = vector.broadcast %cst_2 : f32 to vector<16x16x1xf32>
    %5 = arith.maximumf %3, %4 : vector<16x16x1xf32>
    %6 = math.rsqrt %5 : vector<16x16x1xf32>
    %7 = vector.broadcast %6 : vector<16x16x1xf32> to vector<16x16x128xf32>
    %8 = arith.mulf %0, %7 : vector<16x16x128xf32>
    %9 = arith.truncf %8 : vector<16x16x128xf32> to vector<16x16x128xbf16>
    %c0_3 = arith.constant 0 : index
    %c0_4 = arith.constant 0 : index
    %c0_5 = arith.constant 0 : index
    %10 = vector.load %arg4[%c0_3, %c0_4, %c0_5] : memref<16x16x128xbf16, #tpu.memory_space<vmem>>, vector<16x16x128xbf16>
    tpu.vector_store %arg4[%c0_3, %c0_4, %c0_5], %9 {strides = array<i32>} : memref<16x16x128xbf16, #tpu.memory_space<vmem>>, vector<16x16x128xbf16>,
    %c0_6 = arith.constant 0 : index
    %c0_7 = arith.constant 0 : index
    %c0_8 = arith.constant 0 : index
    %11 = vector.load %arg3[%c0_6, %c0_7, %c0_8] : memref<2x3x128xf32, #tpu.memory_space<vmem>>, vector<2x3x128xf32>
    %12 = arith.extf %9 : vector<16x16x128xbf16> to vector<16x16x128xf32>
    %13 = vector.extract_strided_slice %11 {offsets = [0, 1, 0], sizes = [1, 1, 128], strides = [1, 1, 1]} : vector<2x3x128xf32> to vector<1x1x128xf32>
    %14 = vector.shape_cast %13 : vector<1x1x128xf32> to vector<1x128xf32>
    %15 = vector.extract_strided_slice %11 {offsets = [0, 2, 0], sizes = [1, 1, 128], strides = [1, 1, 1]} : vector<2x3x128xf32> to vector<1x1x128xf32>
    %16 = vector.shape_cast %15 : vector<1x1x128xf32> to vector<1x128xf32>
    %17 = vector.shape_cast %14 : vector<1x128xf32> to vector<1x1x128xf32>
    %18 = vector.broadcast %17 : vector<1x1x128xf32> to vector<16x16x128xf32>
    %19 = arith.mulf %12, %18 : vector<16x16x128xf32>
    %cst_9 = arith.constant dense<0.000000e+00> : vector<16x16xf32>
    %20 = vector.multi_reduction <add>, %19, %cst_9 [2] : vector<16x16x128xf32> to vector<16x16xf32>
    %c0_10 = arith.constant 0 : index
    %c0_11 = arith.constant 0 : index
    %c0_12 = arith.constant 0 : index
    %21 = vector.load %arg5[%c0_10, %c0_11, %c0_12] : memref<2x16x16xf32, #tpu.memory_space<vmem>>, vector<1x16x16xf32>
    %22 = vector.shape_cast %21 : vector<1x16x16xf32> to vector<16x16xf32>
    %23 = vector.shape_cast %20 : vector<16x16xf32> to vector<1x16x16xf32>
    tpu.vector_store %arg5[%c0_10, %c0_11, %c0_12], %23 {strides = array<i32>} : memref<2x16x16xf32, #tpu.memory_space<vmem>>, vector<1x16x16xf32>,
    %24 = vector.shape_cast %16 : vector<1x128xf32> to vector<1x1x128xf32>
    %25 = vector.broadcast %24 : vector<1x1x128xf32> to vector<16x16x128xf32>
    %26 = arith.mulf %12, %25 : vector<16x16x128xf32>
    %cst_13 = arith.constant dense<0.000000e+00> : vector<16x16xf32>
    %27 = vector.multi_reduction <add>, %26, %cst_13 [2] : vector<16x16x128xf32> to vector<16x16xf32>
    %c0_14 = arith.constant 0 : index
    %c0_15 = arith.constant 0 : index
    %c0_16 = arith.constant 0 : index
    %28 = vector.load %arg6[%c0_14, %c0_15, %c0_16] : memref<2x16x16xf32, #tpu.memory_space<vmem>>, vector<1x16x16xf32>
    %29 = vector.shape_cast %28 : vector<1x16x16xf32> to vector<16x16xf32>
    %30 = vector.shape_cast %27 : vector<16x16xf32> to vector<1x16x16xf32>
    tpu.vector_store %arg6[%c0_14, %c0_15, %c0_16], %30 {strides = array<i32>} : memref<2x16x16xf32, #tpu.memory_space<vmem>>, vector<1x16x16xf32>,
    %31 = vector.extract_strided_slice %11 {offsets = [1, 1, 0], sizes = [1, 1, 128], strides = [1, 1, 1]} : vector<2x3x128xf32> to vector<1x1x128xf32>
    %32 = vector.shape_cast %31 : vector<1x1x128xf32> to vector<1x128xf32>
    %33 = vector.extract_strided_slice %11 {offsets = [1, 2, 0], sizes = [1, 1, 128], strides = [1, 1, 1]} : vector<2x3x128xf32> to vector<1x1x128xf32>
    %34 = vector.shape_cast %33 : vector<1x1x128xf32> to vector<1x128xf32>
    %35 = vector.shape_cast %32 : vector<1x128xf32> to vector<1x1x128xf32>
    %36 = vector.broadcast %35 : vector<1x1x128xf32> to vector<16x16x128xf32>
    %37 = arith.mulf %12, %36 : vector<16x16x128xf32>
    %cst_17 = arith.constant dense<0.000000e+00> : vector<16x16xf32>
    %38 = vector.multi_reduction <add>, %37, %cst_17 [2] : vector<16x16x128xf32> to vector<16x16xf32>
    %c1 = arith.constant 1 : index
    %c0_18 = arith.constant 0 : index
    %c0_19 = arith.constant 0 : index
    %39 = vector.load %arg5[%c1, %c0_18, %c0_19] : memref<2x16x16xf32, #tpu.memory_space<vmem>>, vector<1x16x16xf32>
    %40 = vector.shape_cast %39 : vector<1x16x16xf32> to vector<16x16xf32>
    %41 = vector.shape_cast %38 : vector<16x16xf32> to vector<1x16x16xf32>
    tpu.vector_store %arg5[%c1, %c0_18, %c0_19], %41 {strides = array<i32>} : memref<2x16x16xf32, #tpu.memory_space<vmem>>, vector<1x16x16xf32>,
    %42 = vector.shape_cast %34 : vector<1x128xf32> to vector<1x1x128xf32>
    %43 = vector.broadcast %42 : vector<1x1x128xf32> to vector<16x16x128xf32>
    %44 = arith.mulf %12, %43 : vector<16x16x128xf32>
    %cst_20 = arith.constant dense<0.000000e+00> : vector<16x16xf32>
    %45 = vector.multi_reduction <add>, %44, %cst_20 [2] : vector<16x16x128xf32> to vector<16x16xf32>
    %c1_21 = arith.constant 1 : index
    %c0_22 = arith.constant 0 : index
    %c0_23 = arith.constant 0 : index
    %46 = vector.load %arg6[%c1_21, %c0_22, %c0_23] : memref<2x16x16xf32, #tpu.memory_space<vmem>>, vector<1x16x16xf32>
    %47 = vector.shape_cast %46 : vector<1x16x16xf32> to vector<16x16xf32>
    %48 = vector.shape_cast %45 : vector<16x16xf32> to vector<1x16x16xf32>
    tpu.vector_store %arg6[%c1_21, %c0_22, %c0_23], %48 {strides = array<i32>} : memref<2x16x16xf32, #tpu.memory_space<vmem>>, vector<1x16x16xf32>,
    return
  }
  func.func @transform_0(%arg0: i32, %arg1: i32) -> (i32, i32, i32) {
    %c0_i32 = arith.constant 0 : i32
    %c0_i32_0 = arith.constant 0 : i32
    return %arg0, %arg1, %c0_i32 : i32, i32, i32
  }
  func.func @transform_1(%arg0: i32, %arg1: i32) -> (i32, i32, i32) {
    %c0_i32 = arith.constant 0 : i32
    %c0_i32_0 = arith.constant 0 : i32
    %c0_i32_1 = arith.constant 0 : i32
    %c0_i32_2 = arith.constant 0 : i32
    return %c0_i32, %c0_i32_0, %c0_i32_1 : i32, i32, i32
  }
  func.func @transform_2(%arg0: i32, %arg1: i32) -> (i32, i32, i32) {
    %c0_i32 = arith.constant 0 : i32
    %c0_i32_0 = arith.constant 0 : i32
    return %arg0, %arg1, %c0_i32 : i32, i32, i32
  }
  func.func @transform_3(%arg0: i32, %arg1: i32) -> (i32, i32, i32) {
    %c0_i32 = arith.constant 0 : i32
    %c0_i32_0 = arith.constant 0 : i32
    return %c0_i32, %arg0, %arg1 : i32, i32, i32
  }
  func.func @transform_4(%arg0: i32, %arg1: i32) -> (i32, i32, i32) {
    %c0_i32 = arith.constant 0 : i32
    %c0_i32_0 = arith.constant 0 : i32
    return %c0_i32, %arg0, %arg1 : i32, i32, i32
  }
}

</mosaic_0001>

<bundles_post_ra>
// kernel: tpu_custom_call.1
= control target key start
LH: loop header
LB: loop body
LE: loop exit
PB: predicated region body
PF: predicated region fallthrough
CT: control target
= control target key end

     0   :  { %10 = vsyncpa [#allocation3], 0  ;;  %s3179_s0 = inlined_call_operand.hbm [shape: f32[16,16,128], index: 0, kind: input, shape index: {}]   ;;  %s3180_s1 = inlined_call_operand.vmem [shape: f32[2,3,128], index: 1, kind: input, shape index: {}]   ;;  %s3181_s2 = inlined_call_operand.hbm [shape: bf16[16,16,128], index: 2, kind: output, shape index: {0}]   ;;  %s3182_s3 = inlined_call_operand.hbm [shape: f32[2,16,16], index: 3, kind: output, shape index: {1}]   ;;  %s3183_s4 = inlined_call_operand.hbm [shape: f32[2,16,16], index: 4, kind: output, shape index: {2}]  }
   0x1   :  { %11 = vsyncpa [#allocation4], 0 }
   0x2   :  { %12 = vsyncpa [#allocation7], 0  ;;  %s2011_s15 = smov [#allocation2]   ;;  %s1917_s19 = scalar_lea.hbm %s3179_s0, 4096 }
   0x3   :  { %s18_s16 = sshll.u32 %s2011_s15, 4  ;;  %p1918_p0 = scmp.ne.s32.totalorder %s3179_s0, %s1917_s19  ;;  %s19_s16 = int_to_ptr.vmem [resolvable:$true] %s18_s16 }
   0x4   :  { %p1921_p1 = scmp.lt.u32.totalorder %s1917_s19, %s3179_s0 }
   0x6   :  { %p1923_p2 = pnand %p1921_p1, %p1918_p0 }
   0x8   :  { %1926 = shalt.err (!%p1923_p2)
}
   0x9   :  { %s1927_s24 = scalar_lea.vmem %s19_s16, 4096  ;;  %p1932_p4 = scmp.lt.s32.totalorder %s19_s16, %s19_s16 }
   0xa   :  { %p1928_p3 = scmp.ne.s32.totalorder %s19_s16, %s1927_s24  ;;  %p1933_p5 = scmp.lt.s32.totalorder %s1927_s24, %s1927_s24 }
   0xc   :  { %p1934_p6 = por %p1933_p5, %p1932_p4 }
   0xe   :  { %p1935_p7 = pnand %p1934_p6, %p1928_p3 }
  0x10   :  { %1938 = shalt.err (!%p1935_p7)
}
  0x11   :  { %s2012_s25 = smov 128   ;;  %s2013_s26 = smov 8  }
  0x12   :  { %24 = dma.hbm_to_vmem [thread:$0]  %s3179_s0, 4096, %s19_s16, [#allocation3], %s2012_s25, %s2012_s25, %s2013_s26  }
  0x13   :  { %2005 = dma.done.wait [#allocation3], 4096  }
  0x14   :  { %2006 = vsyncadd [#allocation3], 4294963200  ;;  %v2059_v0 = vld [vmem:[#allocation2 + $0x10] sm:$0xff]  ;;  %v2061_v1 = vld [vmem:[#allocation2] sm:$0xff]  ;;  %v448_v38 = vlaneseq  ;;  %vm591_vm0 = vcmask 130112   ;;  %vm728_vm1 = vcmask 1041409  }
  0x15   :  { %v2063_v2 = vld [vmem:[#allocation2 + $0x18] sm:$0xff]  ;;  %v64_v3 = vmul.f32 %v2059_v0, %v2059_v0  ;;  %v62_v4 = vmul.f32 %v2061_v1, %v2061_v1  ;;  %v2069_v5 = vld [vmem:[#allocation2 + $0x8] sm:$0xff]  ;;  %v2077_v9 = vld [vmem:[#allocation2 + $0x20] sm:$0xff]  ;;  %vm730_vm2 = vcmask 1042434   ;;  %vm732_vm3 = vcmask 1043459  }
  0x16   :  { %v65_v6 = vmul.f32 %v2063_v2, %v2063_v2  ;;  %v63_v7 = vmul.f32 %v2069_v5, %v2069_v5  ;;  %v2075_v8 = vld [vmem:[#allocation2 + $0x28] sm:$0xff]  ;;  %v66_v11 = vmul.f32 %v2077_v9, %v2077_v9  ;;  %v2083_v12 = vld [vmem:[#allocation2 + $0x38] sm:$0xff]  ;;  %v2085_v13 = vld [vmem:[#allocation2 + $0x30] sm:$0xff]  ;;  %v2139_v41 = vshrl.u32 %v448_v38, 7 }
  0x17   :  { %98 = vadd.xlane.f32.xlu1 %v64_v3  ;;  %94 = vadd.xlane.f32.xlu0 %v62_v4  ;;  %v67_v10 = vmul.f32 %v2075_v8, %v2075_v8  ;;  %v69_v14 = vmul.f32 %v2083_v12, %v2083_v12  ;;  %v68_v15 = vmul.f32 %v2085_v13, %v2085_v13  ;;  %v2091_v16 = vld [vmem:[#allocation2 + $0x48] sm:$0xff]  ;;  %v2093_v17 = vld [vmem:[#allocation2 + $0x40] sm:$0xff]  ;;  %v2099_v20 = vld [vmem:[#allocation2 + $0x58] sm:$0xff]  ;;  %v581_v61 = vand.u32 127, %v448_v38 }
  0x18   :  { %v71_v18 = vmul.f32 %v2091_v16, %v2091_v16  ;;  %v70_v19 = vmul.f32 %v2093_v17, %v2093_v17  ;;  %v2101_v21 = vld [vmem:[#allocation2 + $0x50] sm:$0xff]  ;;  %v73_v22 = vmul.f32 %v2099_v20, %v2099_v20  ;;  %v2107_v24 = vld [vmem:[#allocation2 + $0x68] sm:$0xff]  ;;  %v2109_v25 = vld [vmem:[#allocation2 + $0x60] sm:$0xff]  ;;  %v756_v44 = vsub.s32 2, %v2139_v41 }
  0x19   :  { %v72_v23 = vmul.f32 %v2101_v21, %v2101_v21  ;;  %v75_v26 = vmul.f32 %v2107_v24, %v2107_v24  ;;  %v74_v27 = vmul.f32 %v2109_v25, %v2109_v25  ;;  %v2115_v28 = vld [vmem:[#allocation2 + $0x78] sm:$0xff]  ;;  %v2117_v29 = vld [vmem:[#allocation2 + $0x70] sm:$0xff]  ;;  %v2123_v32 = vld [vmem:[#allocation2 + $0x88] sm:$0xff]  ;;  %v2189_v3 = vsub.s32 %v581_v61, %v2139_v41 }
  0x1a   :  { %v77_v30 = vmul.f32 %v2115_v28, %v2115_v28  ;;  %v76_v31 = vmul.f32 %v2117_v29, %v2117_v29  ;;  %v2125_v33 = vld [vmem:[#allocation2 + $0x80] sm:$0xff]  ;;  %v79_v34 = vmul.f32 %v2123_v32, %v2123_v32  ;;  %v2131_v36 = vld [vmem:[#allocation2 + $0x98] sm:$0xff]  ;;  %v2133_v37 = vld [vmem:[#allocation2 + $0x90] sm:$0xff]  ;;  %v586_v4 = vadd.s32 4294967288, %v581_v61 }
  0x1b   :  { %100 = vadd.xlane.f32.xlu1 %v65_v6  ;;  %96 = vadd.xlane.f32.xlu0 %v63_v7  ;;  %v78_v35 = vmul.f32 %v2125_v33, %v2125_v33  ;;  %v81_v39 = vmul.f32 %v2131_v36, %v2131_v36  ;;  %v80_v40 = vmul.f32 %v2133_v37, %v2133_v37  ;;  %v2141_v42 = vld [vmem:[#allocation2 + $0xa8] sm:$0xff]  ;;  %v2143_v43 = vld [vmem:[#allocation2 + $0xa0] sm:$0xff]  ;;  %v2160_v49 = vld [vmem:[#allocation2 + $0xb8] sm:$0xff]  ;;  %vm734_vm4 = vcmask 1044484  }
  0x1c   :  { %v2149_v45 = vld [vmem:[%s3180_s1] sm:$0x7]  ;;  %v83_v46 = vmul.f32 %v2141_v42, %v2141_v42  ;;  %v82_v47 = vmul.f32 %v2143_v43, %v2143_v43  ;;  %v2162_v50 = vld [vmem:[#allocation2 + $0xb0] sm:$0xff]  ;;  %v85_v51 = vmul.f32 %v2160_v49, %v2160_v49  ;;  %v2168_v53 = vld [vmem:[#allocation2 + $0xc8] sm:$0xff]  ;;  %3186 = vst [vmem:[#allocation12_spill] sm:$0xff] %v2189_v3  ;;  %vm736_vm5 = vcmask 1045509  }
  0x1d   :  { %v2158_v48 = vrot.slane %v2149_v45, %v756_v44  ;;  %v84_v52 = vmul.f32 %v2162_v50, %v2162_v50  ;;  %v2170_v54 = vld [vmem:[#allocation2 + $0xc0] sm:$0xff]  ;;  %v87_v55 = vmul.f32 %v2168_v53, %v2168_v53  ;;  %v2176_v57 = vld [vmem:[#allocation2 + $0xd8] sm:$0xff]  ;;  %v2178_v58 = vld [vmem:[#allocation2 + $0xd0] sm:$0xff]  ;;  %vm738_vm6 = vcmask 1046534  }
  0x1e   :  { %v86_v56 = vmul.f32 %v2170_v54, %v2170_v54  ;;  %v89_v59 = vmul.f32 %v2176_v57, %v2176_v57  ;;  %v88_v60 = vmul.f32 %v2178_v58, %v2178_v58  ;;  %v2184_v62 = vld [vmem:[#allocation2 + $0xe8] sm:$0xff]  ;;  %v2186_v63 = vld [vmem:[#allocation2 + $0xe0] sm:$0xff]  ;;  %vm740_vm7 = vcmask 1047559  }
  0x1f   :  { %104 = vadd.xlane.f32.xlu1 %v67_v10  ;;  %102 = vadd.xlane.f32.xlu0 %v66_v11  ;;  %v91_v6 = vmul.f32 %v2184_v62, %v2184_v62  ;;  %v90_v7 = vmul.f32 %v2186_v63, %v2186_v63  ;;  %v2196_v10 = vsub.s32 %v586_v4, %v2139_v41  ;;  %v2198_v11 = vld [vmem:[#allocation2 + $0xf8] sm:$0xff]  ;;  %v450_v4 = vsub.s32 1, %v2139_v41 }
  0x20   :  { %vm751_vm8 = vcmask 130048  }
  0x21   :  { %3187 = vst [vmem:[#allocation13_spill] sm:$0xff] %v2196_v10 }
  0x23   :  { %108 = vadd.xlane.f32.xlu1 %v69_v14  ;;  %106 = vadd.xlane.f32.xlu0 %v68_v15  ;;  %v2200_v14 = vld [vmem:[#allocation2 + $0xf0] sm:$0xff]  ;;  %v93_v15 = vmul.f32 %v2198_v11, %v2198_v11 }
  0x27   :  { %112 = vadd.xlane.f32.xlu1 %v71_v18  ;;  %110 = vadd.xlane.f32.xlu0 %v70_v19  ;;  %v92_v18 = vmul.f32 %v2200_v14, %v2200_v14 }
  0x2b   :  { %116 = vadd.xlane.f32.xlu1 %v73_v22  ;;  %114 = vadd.xlane.f32.xlu0 %v72_v23 }
  0x2f   :  { %120 = vadd.xlane.f32.xlu1 %v75_v26  ;;  %118 = vadd.xlane.f32.xlu0 %v74_v27 }
  0x33   :  { %124 = vadd.xlane.f32.xlu1 %v77_v30  ;;  %122 = vadd.xlane.f32.xlu0 %v76_v31 }
  0x37   :  { %128 = vadd.xlane.f32.xlu1 %v79_v34  ;;  %126 = vadd.xlane.f32.xlu0 %v78_v35 }
  0x3b   :  { %132 = vadd.xlane.f32.xlu1 %v81_v39  ;;  %130 = vadd.xlane.f32.xlu0 %v80_v40 }
  0x3f   :  { %136 = vadd.xlane.f32.xlu1 %v83_v46  ;;  %134 = vadd.xlane.f32.xlu0 %v82_v47 }
  0x43   :  { %140 = vadd.xlane.f32.xlu1 %v85_v51  ;;  %138 = vadd.xlane.f32.xlu0 %v84_v52 }
  0x47   :  { %144 = vadd.xlane.f32.xlu1 %v87_v55  ;;  %142 = vadd.xlane.f32.xlu0 %v86_v56 }
  0x4b   :  { %148 = vadd.xlane.f32.xlu1 %v89_v59  ;;  %146 = vadd.xlane.f32.xlu0 %v88_v60 }
  0x4f   :  { %152 = vadd.xlane.f32.xlu1 %v91_v6  ;;  %150 = vadd.xlane.f32.xlu0 %v90_v7 }
  0x53   :  { %156 = vadd.xlane.f32.xlu1 %v93_v15  ;;  %154 = vadd.xlane.f32.xlu0 %v92_v18 }
  0xa4   :  { %v99_v19 = vpop.xlane.xlu1 %98  ;;  %v95_v22 = vpop.xlane.xlu0 %94 }
  0xa5   :  { %v160_v23 = vmax.f32 %v99_v19, 1e-24  ;;  %v158_v26 = vmax.f32 %v95_v22, 1e-24  ;;  %v415_v22 = vld [vmem:[%s3180_s1 + $0x4] sm:$0x7] }
  0xa6   :  { %s2014_s1 = smov [#allocation5]  }
  0xa7   :  { %1853 = vrsqrt.f32 %v160_v23  ;;  %s1643_s6 = sshll.u32 %s2014_s1, 4  ;;  %s1644_s6 = int_to_ptr.vmem [resolvable:$true] %s1643_s6 }
  0xa8   :  { %v101_v27 = vpop.xlane.xlu1 %100  ;;  %v97_v30 = vpop.xlane.xlu0 %96  ;;  %1855 = vrsqrt.f32 %v158_v26  ;;  %s1939_s7 = scalar_lea.vmem %s1644_s6, 2048  ;;  %p1944_p9 = scmp.lt.s32.totalorder %s1644_s6, %s1644_s6 }
  0xa9   :  { %v161_v31 = vmax.f32 %v101_v27, 1e-24  ;;  %v159_v34 = vmax.f32 %v97_v30, 1e-24  ;;  %v2215_v30 = vrot.slane %v2149_v45, %v450_v4  ;;  %p1940_p8 = scmp.ne.s32.totalorder %s1644_s6, %s1939_s7  ;;  %p1945_p10 = scmp.lt.s32.totalorder %s1939_s7, %s1939_s7 }
  0xab   :  { %1857 = vrsqrt.f32 %v161_v31  ;;  %p1946_p11 = por %p1945_p10, %p1944_p9 }
  0xac   :  { %1859 = vrsqrt.f32 %v159_v34  ;;  %v105_v35 = vpop.xlane.xlu1 %104  ;;  %v103_v38 = vpop.xlane.xlu0 %102 }
  0xad   :  { %v163_v39 = vmax.f32 %v105_v35, 1e-24  ;;  %v162_v40 = vmax.f32 %v103_v38, 1e-24  ;;  %p1947_p12 = pnand %p1946_p11, %p1940_p8 }
  0xaf   :  { %1861 = vrsqrt.f32 %v163_v39  ;;  %v2217_v39 = vrot.slane %v415_v22, %v450_v4 }
  0xb0   :  { %1863 = vrsqrt.f32 %v162_v40  ;;  %v109_v46 = vpop.xlane.xlu1 %108  ;;  %v107_v47 = vpop.xlane.xlu0 %106 }
  0xb1   :  { %v1854_v51 = vpop.eup %1853  ;;  %v165_v52 = vmax.f32 %v109_v46, 1e-24  ;;  %v164_v55 = vmax.f32 %v107_v47, 1e-24  ;;  %v2226_v47 = vrot.slane %v415_v22, %v756_v44 }
  0xb2   :  { %v1856_v56 = vpop.eup %1855  ;;  %v224_v59 = vmul.f32 %v1854_v51, %v2059_v0 }
  0xb3   :  { %1865 = vrsqrt.f32 %v165_v52  ;;  %v222_v23 = vmul.f32 %v1856_v56, %v2061_v1 }
  0xb4   :  { %1867 = vrsqrt.f32 %v164_v55  ;;  %v113_v60 = vpop.xlane.xlu1 %112  ;;  %v111_v61 = vpop.xlane.xlu0 %110 }
  0xb5   :  { %v1858_v6 = vpop.eup %1857  ;;  %v167_v7 = vmax.f32 %v113_v60, 1e-24  ;;  %v166_v15 = vmax.f32 %v111_v61, 1e-24 }
  0xb6   :  { %v1860_v18 = vpop.eup %1859  ;;  %v225_v19 = vmul.f32 %v1858_v6, %v2063_v2 }
  0xb7   :  { %v223_v26 = vmul.f32 %v1860_v18, %v2069_v5  ;;  %1869 = vrsqrt.f32 %v167_v7 }
  0xb8   :  { %1871 = vrsqrt.f32 %v166_v15  ;;  %v117_v0 = vpop.xlane.xlu1 %116  ;;  %v115_v27 = vpop.xlane.xlu0 %114  ;;  %v255_v31 = vpack.c.bf16 %v225_v19, %v224_v59 }
  0xb9   :  { %v1862_v34 = vpop.eup %1861  ;;  %v169_v35 = vmax.f32 %v117_v0, 1e-24  ;;  %v168_v38 = vmax.f32 %v115_v27, 1e-24  ;;  %v254_v2 = vpack.c.bf16 %v223_v26, %v222_v23 }
  0xba   :  { %v1864_v40 = vpop.eup %1863  ;;  %v227_v46 = vmul.f32 %v1862_v34, %v2075_v8  ;;  %1830 = vst [vmem:[#allocation5 + $0x8] sm:$0xff] %v255_v31   ;;  %v2220_v1 = vunpack.c.h.bf16 %v255_v31  ;;  %v2222_v5 = vunpack.c.l.bf16 %v255_v31 }
  0xbb   :  { %v226_v45 = vmul.f32 %v1864_v40, %v2077_v9  ;;  %1873 = vrsqrt.f32 %v169_v35  ;;  %v2229_v51 = vunpack.c.h.bf16 %v254_v2  ;;  %1754 = vst [vmem:[#allocation5] sm:$0xff] %v254_v2   ;;  %v2231_v52 = vunpack.c.l.bf16 %v254_v2 }
  0xbc   :  { %1875 = vrsqrt.f32 %v168_v38  ;;  %v121_v55 = vpop.xlane.xlu1 %120  ;;  %v119_v8 = vpop.xlane.xlu0 %118  ;;  %v455_v56 = vmul.f32 %v2215_v30, %v2220_v1  ;;  %v454_v59 = vmul.f32 %v2215_v30, %v2222_v5  ;;  %v2239_v41 = vmul.f32 %v2158_v48, %v2220_v1 }
  0xbd   :  { %v1866_v9 = vpop.eup %1865  ;;  %v453_v44 = vmul.f32 %v2215_v30, %v2229_v51  ;;  %v452_v60 = vmul.f32 %v2215_v30, %v2231_v52  ;;  %v171_v61 = vmax.f32 %v121_v55, 1e-24  ;;  %v170_v4 = vmax.f32 %v119_v8, 1e-24 }
  0xbe   :  { %v1868_v6 = vpop.eup %1867  ;;  %v229_v7 = vmul.f32 %v1866_v9, %v2083_v12  ;;  %v256_v15 = vpack.c.bf16 %v227_v46, %v226_v45  ;;  %v2248_v18 = vmul.f32 %v2158_v48, %v2229_v51  ;;  %v2252_v19 = vmul.f32 %v2158_v48, %v2231_v52 }
  0xbf   :  { %v228_v22 = vmul.f32 %v1868_v6, %v2085_v13  ;;  %486 = vadd.xlane.f32.xlu1 %v453_v44  ;;  %484 = vadd.xlane.f32.xlu0 %v452_v60  ;;  %1877 = vrsqrt.f32 %v171_v61  ;;  %v2257_v23 = vmul.f32 %v2158_v48, %v2222_v5  ;;  %v2261_v12 = vmul.f32 %v2217_v39, %v2229_v51 }
  0xc0   :  { %1879 = vrsqrt.f32 %v170_v4  ;;  %v125_v26 = vpop.xlane.xlu1 %124  ;;  %v123_v0 = vpop.xlane.xlu0 %122  ;;  %v2263_v27 = vunpack.c.h.bf16 %v256_v15  ;;  %1831 = vst [vmem:[#allocation5 + $0x10] sm:$0xff] %v256_v15   ;;  %v2265_v31 = vunpack.c.l.bf16 %v256_v15  ;;  %v2269_v13 = vmul.f32 %v2217_v39, %v2231_v52 }
  0xc1   :  { %3188 = vst [vmem:[#allocation14_spill] sm:$0xff] %v2261_v12  ;;  %v1870_v34 = vpop.eup %1869  ;;  %v173_v35 = vmax.f32 %v125_v26, 1e-24  ;;  %v172_v38 = vmax.f32 %v123_v0, 1e-24  ;;  %v257_v2 = vpack.c.bf16 %v229_v7, %v228_v22  ;;  %v2273_v40 = vmul.f32 %v2217_v39, %v2220_v1 }
  0xc2   :  { %3189 = vst [vmem:[#allocation15_spill] sm:$0xff] %v2269_v13  ;;  %v1872_v46 = vpop.eup %1871  ;;  %v231_v45 = vmul.f32 %v1870_v34, %v2091_v16  ;;  %v457_v55 = vmul.f32 %v2215_v30, %v2263_v27  ;;  %v456_v8 = vmul.f32 %v2215_v30, %v2265_v31  ;;  %v2282_v9 = vmul.f32 %v2158_v48, %v2263_v27 }
  0xc3   :  { %3190 = vst [vmem:[#allocation16_spill] sm:$0xff] %v2273_v40  ;;  %v230_v44 = vmul.f32 %v1872_v46, %v2093_v17  ;;  %490 = vadd.xlane.f32.xlu1 %v455_v56  ;;  %488 = vadd.xlane.f32.xlu0 %v454_v59  ;;  %1881 = vrsqrt.f32 %v173_v35  ;;  %v2285_v60 = vunpack.c.h.bf16 %v257_v2  ;;  %1832 = vst [vmem:[#allocation5 + $0x18] sm:$0xff] %v257_v2   ;;  %v2287_v61 = vunpack.c.l.bf16 %v257_v2 }
  0xc4   :  { %1883 = vrsqrt.f32 %v172_v38  ;;  %v129_v16 = vpop.xlane.xlu1 %128  ;;  %v127_v4 = vpop.xlane.xlu0 %126  ;;  %v2291_v6 = vmul.f32 %v2158_v48, %v2265_v31  ;;  %v2295_v7 = vmul.f32 %v2217_v39, %v2222_v5  ;;  %v2299_v17 = vmul.f32 %v2217_v39, %v2263_v27 }
  0xc5   :  { %v1874_v56 = vpop.eup %1873  ;;  %v175_v59 = vmax.f32 %v129_v16, 1e-24  ;;  %v174_v15 = vmax.f32 %v127_v4, 1e-24  ;;  %v459_v22 = vmul.f32 %v2215_v30, %v2285_v60  ;;  %v458_v26 = vmul.f32 %v2215_v30, %v2287_v61 }
  0xc6   :  { %3191 = vst [vmem:[#allocation17_spill] sm:$0xff] %v2295_v7  ;;  %3192 = vst [vmem:[#allocation18_spill] sm:$0xff] %v2299_v17  ;;  %v1876_v0 = vpop.eup %1875  ;;  %v233_v34 = vmul.f32 %v1874_v56, %v2099_v20  ;;  %v258_v35 = vpack.c.bf16 %v231_v45, %v230_v44  ;;  %v2308_v38 = vmul.f32 %v2158_v48, %v2285_v60 }
  0xc7   :  { %v2312_v2 = vmul.f32 %v2158_v48, %v2287_v61  ;;  %v232_v46 = vmul.f32 %v1876_v0, %v2101_v21  ;;  %494 = vadd.xlane.f32.xlu1 %v457_v55  ;;  %492 = vadd.xlane.f32.xlu0 %v456_v8  ;;  %1885 = vrsqrt.f32 %v175_v59  ;;  %v2317_v16 = vmul.f32 %v2217_v39, %v2265_v31 }
  0xc8   :  { %v2321_v20 = vmul.f32 %v2217_v39, %v2285_v60  ;;  %1887 = vrsqrt.f32 %v174_v15  ;;  %v133_v45 = vpop.xlane.xlu1 %132  ;;  %v131_v44 = vpop.xlane.xlu0 %130  ;;  %v2323_v4 = vunpack.c.h.bf16 %v258_v35  ;;  %1833 = vst [vmem:[#allocation5 + $0x20] sm:$0xff] %v258_v35   ;;  %v2325_v56 = vunpack.c.l.bf16 %v258_v35 }
  0xc9   :  { %3193 = vst [vmem:[#allocation19_spill] sm:$0xff] %v2317_v16  ;;  %v2329_v21 = vmul.f32 %v2217_v39, %v2287_v61  ;;  %v1878_v55 = vpop.eup %1877  ;;  %v177_v8 = vmax.f32 %v133_v45, 1e-24  ;;  %v176_v59 = vmax.f32 %v131_v44, 1e-24  ;;  %v259_v0 = vpack.c.bf16 %v233_v34, %v232_v46 }
  0xca   :  { %3194 = vst [vmem:[#allocation20_spill] sm:$0xff] %v2321_v20  ;;  %v2333_v3 = vmul.f32 %v2226_v47, %v2231_v52  ;;  %v1880_v15 = vpop.eup %1879  ;;  %v235_v10 = vmul.f32 %v1878_v55, %v2107_v24  ;;  %v461_v20 = vmul.f32 %v2215_v30, %v2323_v4  ;;  %v460_v35 = vmul.f32 %v2215_v30, %v2325_v56 }
  0xcb   :  { %3195 = vst [vmem:[#allocation21_spill] sm:$0xff] %v2329_v21  ;;  %v2342_v21 = vmul.f32 %v2158_v48, %v2323_v4  ;;  %v234_v45 = vmul.f32 %v1880_v15, %v2109_v25  ;;  %498 = vadd.xlane.f32.xlu1 %v459_v22  ;;  %496 = vadd.xlane.f32.xlu0 %v458_v26  ;;  %1889 = vrsqrt.f32 %v177_v8  ;;  %v2345_v52 = vunpack.c.h.bf16 %v259_v0 }
  0xcc   :  { %3196 = vst [vmem:[#allocation22_spill] sm:$0xff] %v2333_v3  ;;  %1834 = vst [vmem:[#allocation5 + $0x28] sm:$0xff] %v259_v0   ;;  %v2347_v34 = vunpack.c.l.bf16 %v259_v0  ;;  %1891 = vrsqrt.f32 %v176_v59  ;;  %v137_v24 = vpop.xlane.xlu1 %136  ;;  %v135_v46 = vpop.xlane.xlu0 %134  ;;  %v2351_v44 = vmul.f32 %v2158_v48, %v2325_v56  ;;  %v2355_v55 = vmul.f32 %v2217_v39, %v2323_v4 }
  0xcd   :  { %v2359_v25 = vmul.f32 %v2217_v39, %v2325_v56  ;;  %v1882_v22 = vpop.eup %1881  ;;  %v179_v26 = vmax.f32 %v137_v24, 1e-24  ;;  %v178_v8 = vmax.f32 %v135_v46, 1e-24  ;;  %v463_v59 = vmul.f32 %v2215_v30, %v2345_v52 }
  0xce   :  { %3197 = vst [vmem:[#allocation23_spill] sm:$0xff] %v2355_v55  ;;  %v1884_v0 = vpop.eup %1883  ;;  %v237_v15 = vmul.f32 %v1882_v22, %v2115_v28  ;;  %v260_v3 = vpack.c.bf16 %v235_v10, %v234_v45  ;;  %v2366_v16 = vmul.f32 %v2158_v48, %v2345_v52  ;;  %v2370_v55 = vmul.f32 %v2158_v48, %v2347_v34 }
  0xcf   :  { %3198 = vst [vmem:[#allocation24_spill] sm:$0xff] %v2359_v25  ;;  %v236_v25 = vmul.f32 %v1884_v0, %v2117_v29  ;;  %502 = vadd.xlane.f32.xlu1 %v461_v20  ;;  %500 = vadd.xlane.f32.xlu0 %v460_v35  ;;  %1893 = vrsqrt.f32 %v179_v26  ;;  %v462_v24 = vmul.f32 %v2215_v30, %v2347_v34 }
  0xd0   :  { %v2377_v28 = vmul.f32 %v2217_v39, %v2345_v52  ;;  %1895 = vrsqrt.f32 %v178_v8  ;;  %v141_v10 = vpop.xlane.xlu1 %140  ;;  %v139_v45 = vpop.xlane.xlu0 %138  ;;  %v2379_v46 = vunpack.c.h.bf16 %v260_v3  ;;  %1835 = vst [vmem:[#allocation5 + $0x30] sm:$0xff] %v260_v3   ;;  %v2381_v22 = vunpack.c.l.bf16 %v260_v3 }
  0xd1   :  { %v2385_v29 = vmul.f32 %v2217_v39, %v2347_v34  ;;  %v1886_v20 = vpop.eup %1885  ;;  %v181_v35 = vmax.f32 %v141_v10, 1e-24  ;;  %v180_v26 = vmax.f32 %v139_v45, 1e-24  ;;  %v261_v0 = vpack.c.bf16 %v237_v15, %v236_v25 }
  0xd2   :  { %3199 = vst [vmem:[#allocation25_spill] sm:$0xff] %v2377_v28  ;;  %v1888_v17 = vpop.eup %1887  ;;  %v239_v7 = vmul.f32 %v1886_v20, %v2123_v32  ;;  %v465_v8 = vmul.f32 %v2215_v30, %v2379_v46  ;;  %v464_v28 = vmul.f32 %v2215_v30, %v2381_v22  ;;  %v2394_v3 = vmul.f32 %v2158_v48, %v2379_v46 }
  0xd3   :  { %3200 = vst [vmem:[#allocation26_spill] sm:$0xff] %v2385_v29  ;;  %v238_v40 = vmul.f32 %v1888_v17, %v2125_v33  ;;  %506 = vadd.xlane.f32.xlu1 %v463_v59  ;;  %504 = vadd.xlane.f32.xlu0 %v462_v24  ;;  %1897 = vrsqrt.f32 %v181_v35  ;;  %v2397_v10 = vunpack.c.h.bf16 %v261_v0  ;;  %1836 = vst [vmem:[#allocation5 + $0x38] sm:$0xff] %v261_v0   ;;  %v2399_v25 = vunpack.c.l.bf16 %v261_v0 }
  0xd4   :  { %1899 = vrsqrt.f32 %v180_v26  ;;  %v145_v32 = vpop.xlane.xlu1 %144  ;;  %v143_v15 = vpop.xlane.xlu0 %142  ;;  %v2403_v45 = vmul.f32 %v2158_v48, %v2381_v22  ;;  %v2407_v20 = vmul.f32 %v2217_v39, %v2379_v46  ;;  %v2411_v33 = vmul.f32 %v2217_v39, %v2381_v22 }
  0xd5   :  { %v1890_v17 = vpop.eup %1889  ;;  %v183_v59 = vmax.f32 %v145_v32, 1e-24  ;;  %v182_v24 = vmax.f32 %v143_v15, 1e-24  ;;  %v467_v35 = vmul.f32 %v2215_v30, %v2397_v10  ;;  %v262_v29 = vpack.c.bf16 %v239_v7, %v238_v40 }
  0xd6   :  { %3201 = vst [vmem:[#allocation27_spill] sm:$0xff] %v2407_v20  ;;  %3202 = vst [vmem:[#allocation28_spill] sm:$0xff] %v2411_v33  ;;  %v1892_v26 = vpop.eup %1891  ;;  %v241_v0 = vmul.f32 %v1890_v17, %v2131_v36  ;;  %v2418_v13 = vmul.f32 %v2158_v48, %v2397_v10  ;;  %v2422_v20 = vmul.f32 %v2158_v48, %v2399_v25 }
  0xd7   :  { %v240_v33 = vmul.f32 %v1892_v26, %v2133_v37  ;;  %510 = vadd.xlane.f32.xlu1 %v465_v8  ;;  %508 = vadd.xlane.f32.xlu0 %v464_v28  ;;  %1901 = vrsqrt.f32 %v183_v59  ;;  %v466_v32 = vmul.f32 %v2215_v30, %v2399_v25  ;;  %v2429_v36 = vmul.f32 %v2217_v39, %v2397_v10 }
  0xd8   :  { %3203 = vst [vmem:[#allocation29_spill] sm:$0xff] %v2418_v13  ;;  %3204 = vst [vmem:[#allocation30_spill] sm:$0xff] %v2422_v20  ;;  %1903 = vrsqrt.f32 %v182_v24  ;;  %v149_v40 = vpop.xlane.xlu1 %148  ;;  %v147_v7 = vpop.xlane.xlu0 %146  ;;  %v2431_v15 = vunpack.c.h.bf16 %v262_v29  ;;  %v2433_v17 = vunpack.c.l.bf16 %v262_v29  ;;  %v2437_v37 = vmul.f32 %v2217_v39, %v2399_v25 }
  0xd9   :  { %3205 = vst [vmem:[#allocation31_spill] sm:$0xff] %v2429_v36  ;;  %1837 = vst [vmem:[#allocation5 + $0x40] sm:$0xff] %v262_v29   ;;  %v1894_v28 = vpop.eup %1893  ;;  %v185_v8 = vmax.f32 %v149_v40, 1e-24  ;;  %v184_v59 = vmax.f32 %v147_v7, 1e-24  ;;  %v263_v26 = vpack.c.bf16 %v241_v0, %v240_v33 }
  0xda   :  { %3206 = vst [vmem:[#allocation32_spill] sm:$0xff] %v2437_v37  ;;  %v1896_v12 = vpop.eup %1895  ;;  %v243_v20 = vmul.f32 %v1894_v28, %v2141_v42  ;;  %v469_v24 = vmul.f32 %v2215_v30, %v2431_v15  ;;  %v468_v36 = vmul.f32 %v2215_v30, %v2433_v17  ;;  %v2446_v29 = vmul.f32 %v2158_v48, %v2431_v15 }
  0xdb   :  { %v242_v13 = vmul.f32 %v1896_v12, %v2143_v43  ;;  %514 = vadd.xlane.f32.xlu1 %v467_v35  ;;  %512 = vadd.xlane.f32.xlu0 %v466_v32  ;;  %1905 = vrsqrt.f32 %v185_v8  ;;  %v2449_v40 = vunpack.c.h.bf16 %v263_v26  ;;  %1838 = vst [vmem:[#allocation5 + $0x48] sm:$0xff] %v263_v26   ;;  %v2451_v33 = vunpack.c.l.bf16 %v263_v26 }
  0xdc   :  { %3207 = vst [vmem:[#allocation33_spill] sm:$0xff] %v2446_v29  ;;  %1907 = vrsqrt.f32 %v184_v59  ;;  %v153_v42 = vpop.xlane.xlu1 %152  ;;  %v151_v0 = vpop.xlane.xlu0 %150  ;;  %v2455_v7 = vmul.f32 %v2158_v48, %v2433_v17  ;;  %v2459_v28 = vmul.f32 %v2217_v39, %v2431_v15  ;;  %v2463_v43 = vmul.f32 %v2217_v39, %v2433_v17 }
  0xdd   :  { %v1898_v12 = vpop.eup %1897  ;;  %v187_v35 = vmax.f32 %v153_v42, 1e-24  ;;  %v186_v32 = vmax.f32 %v151_v0, 1e-24  ;;  %v471_v8 = vmul.f32 %v2215_v30, %v2449_v40  ;;  %v264_v37 = vpack.c.bf16 %v243_v20, %v242_v13 }
  0xde   :  { %3208 = vst [vmem:[#allocation34_spill] sm:$0xff] %v2455_v7  ;;  %3209 = vst [vmem:[#allocation35_spill] sm:$0xff] %v2459_v28  ;;  %v1900_v59 = vpop.eup %1899  ;;  %v245_v26 = vmul.f32 %v1898_v12, %v2160_v49  ;;  %v2470_v7 = vmul.f32 %v2158_v48, %v2449_v40  ;;  %v2474_v28 = vmul.f32 %v2158_v48, %v2451_v33 }
  0xdf   :  { %3210 = vst [vmem:[#allocation36_spill] sm:$0xff] %v2463_v43  ;;  %v244_v43 = vmul.f32 %v1900_v59, %v2162_v50  ;;  %518 = vadd.xlane.f32.xlu1 %v469_v24  ;;  %516 = vadd.xlane.f32.xlu0 %v468_v36  ;;  %1909 = vrsqrt.f32 %v187_v35  ;;  %v470_v42 = vmul.f32 %v2215_v30, %v2451_v33  ;;  %v2483_v0 = vunpack.c.h.bf16 %v264_v37 }
  0xe0   :  { %3211 = vst [vmem:[#allocation37_spill] sm:$0xff] %v2470_v7  ;;  %3212 = vst [vmem:[#allocation38_spill] sm:$0xff] %v2474_v28  ;;  %v2481_v49 = vmul.f32 %v2217_v39, %v2449_v40  ;;  %1911 = vrsqrt.f32 %v186_v32  ;;  %v157_v13 = vpop.xlane.xlu1 %156  ;;  %v155_v20 = vpop.xlane.xlu0 %154  ;;  %v2485_v12 = vunpack.c.l.bf16 %v264_v37  ;;  %v2489_v50 = vmul.f32 %v2217_v39, %v2451_v33 }
  0xe1   :  { %1839 = vst [vmem:[#allocation5 + $0x50] sm:$0xff] %v264_v37   ;;  %v1902_v36 = vpop.eup %1901  ;;  %v189_v24 = vmax.f32 %v157_v13, 1e-24  ;;  %v188_v35 = vmax.f32 %v155_v20, 1e-24  ;;  %v265_v59 = vpack.c.bf16 %v245_v26, %v244_v43  ;;  %v473_v32 = vmul.f32 %v2215_v30, %v2483_v0 }
  0xe2   :  { %3213 = vst [vmem:[#allocation39_spill] sm:$0xff] %v2481_v49  ;;  %3214 = vst [vmem:[#allocation40_spill] sm:$0xff] %v2489_v50  ;;  %v1904_v28 = vpop.eup %1903  ;;  %v247_v7 = vmul.f32 %v1902_v36, %v2168_v53  ;;  %v472_v49 = vmul.f32 %v2215_v30, %v2485_v12  ;;  %v2498_v37 = vmul.f32 %v2158_v48, %v2483_v0 }
  0xe3   :  { %v246_v29 = vmul.f32 %v1904_v28, %v2170_v54  ;;  %522 = vadd.xlane.f32.xlu1 %v471_v8  ;;  %520 = vadd.xlane.f32.xlu0 %v470_v42  ;;  %1913 = vrsqrt.f32 %v189_v24  ;;  %v2501_v13 = vunpack.c.h.bf16 %v265_v59  ;;  %1840 = vst [vmem:[#allocation5 + $0x58] sm:$0xff] %v265_v59   ;;  %v2503_v43 = vunpack.c.l.bf16 %v265_v59 }
  0xe4   :  { %1915 = vrsqrt.f32 %v188_v35  ;;  %v2507_v53 = vmul.f32 %v2158_v48, %v2485_v12  ;;  %v2511_v26 = vmul.f32 %v2217_v39, %v2483_v0  ;;  %v2515_v54 = vmul.f32 %v2217_v39, %v2485_v12 }
  0xe5   :  { %v1906_v28 = vpop.eup %1905  ;;  %v475_v8 = vmul.f32 %v2215_v30, %v2501_v13  ;;  %v266_v42 = vpack.c.bf16 %v247_v7, %v246_v29  ;;  %v2521_v20 = vmul.f32 %v2158_v48, %v2501_v13  ;;  %v474_v35 = vmul.f32 %v2215_v30, %v2503_v43 }
  0xe6   :  { %3215 = vst [vmem:[#allocation41_spill] sm:$0xff] %v2511_v26  ;;  %3216 = vst [vmem:[#allocation42_spill] sm:$0xff] %v2515_v54  ;;  %v1908_v36 = vpop.eup %1907  ;;  %v249_v24 = vmul.f32 %v1906_v28, %v2176_v57  ;;  %v2528_v59 = vmul.f32 %v2158_v48, %v2503_v43  ;;  %v2532_v54 = vmul.f32 %v2217_v39, %v2503_v43 }
  0xe7   :  { %v248_v29 = vmul.f32 %v1908_v36, %v2178_v58  ;;  %526 = vadd.xlane.f32.xlu1 %v473_v32  ;;  %524 = vadd.xlane.f32.xlu0 %v472_v49  ;;  %v2535_v7 = vunpack.c.h.bf16 %v266_v42  ;;  %1841 = vst [vmem:[#allocation5 + $0x60] sm:$0xff] %v266_v42   ;;  %v440_v26 = vunpack.c.l.bf16 %v266_v42  ;;  %v2539_v57 = vmul.f32 %v2226_v47, %v2222_v5 }
  0xe8   :  { %v2543_v28 = vmul.f32 %v2226_v47, %v2229_v51  ;;  %v2547_v50 = vmul.f32 %v2226_v47, %v2433_v17  ;;  %v2551_v58 = vmul.f32 %v2226_v47, %v2220_v1  ;;  %v2555_v49 = vmul.f32 %v2226_v47, %v2451_v33 }
  0xe9   :  { %v1910_v32 = vpop.eup %1909  ;;  %v477_v5 = vmul.f32 %v2215_v30, %v2535_v7  ;;  %v267_v42 = vpack.c.bf16 %v249_v24, %v248_v29  ;;  %v2561_v51 = vmul.f32 %v2158_v48, %v2535_v7  ;;  %v2566_v1 = vmul.f32 %v2158_v48, %v440_v26 }
  0xea   :  { %3217 = vst [vmem:[#allocation43_spill] sm:$0xff] %v2547_v50  ;;  %3218 = vst [vmem:[#allocation44_spill] sm:$0xff] %v2551_v58  ;;  %v1912_v36 = vpop.eup %1911  ;;  %v251_v17 = vmul.f32 %v1910_v32, %v2184_v62  ;;  %v476_v50 = vmul.f32 %v2215_v30, %v440_v26  ;;  %v2570_v33 = vmul.f32 %v2226_v47, %v2431_v15 }
  0xeb   :  { %3219 = vst [vmem:[#allocation45_spill] sm:$0xff] %v2555_v49  ;;  %v250_v49 = vmul.f32 %v1912_v36, %v2186_v63  ;;  %530 = vadd.xlane.f32.xlu1 %v475_v8  ;;  %528 = vadd.xlane.f32.xlu0 %v474_v35  ;;  %v443_v24 = vunpack.c.h.bf16 %v267_v42  ;;  %1842 = vst [vmem:[#allocation5 + $0x68] sm:$0xff] %v267_v42   ;;  %v442_v29 = vunpack.c.l.bf16 %v267_v42 }
  0xec   :  { %v2575_v58 = vmul.f32 %v2217_v39, %v2501_v13  ;;  %v2579_v62 = vmul.f32 %v2226_v47, %v2449_v40  ;;  %v2583_v32 = vmul.f32 %v2226_v47, %v2263_v27  ;;  %v2587_v63 = vmul.f32 %v2226_v47, %v2265_v31 }
  0xed   :  { %v2591_v15 = vmul.f32 %v2226_v47, %v2483_v0  ;;  %v1914_v8 = vpop.eup %1913  ;;  %v479_v35 = vmul.f32 %v2215_v30, %v443_v24  ;;  %v478_v42 = vmul.f32 %v2215_v30, %v442_v29  ;;  %v268_v36 = vpack.c.bf16 %v251_v17, %v250_v49 }
  0xee   :  { %3220 = vst [vmem:[#allocation46_spill] sm:$0xff] %v2579_v62  ;;  %3221 = vst [vmem:[#allocation47_spill] sm:$0xff] %v2583_v32  ;;  %v2596_v40 = vmul.f32 %v2158_v48, %v443_v24  ;;  %v1916_v62 = vpop.eup %1915  ;;  %v253_v27 = vmul.f32 %v1914_v8, %v2198_v11  ;;  %v2600_v32 = vmul.f32 %v2158_v48, %v442_v29 }
  0xef   :  { %3222 = vst [vmem:[#allocation48_spill] sm:$0xff] %v2591_v15  ;;  %v2604_v31 = vmul.f32 %v2226_v47, %v2485_v12  ;;  %v2608_v0 = vmul.f32 %v2217_v39, %v2535_v7  ;;  %v252_v15 = vmul.f32 %v1916_v62, %v2200_v14  ;;  %534 = vadd.xlane.f32.xlu1 %v477_v5  ;;  %v445_v49 = vunpack.c.h.bf16 %v268_v36 }
  0xf0   :  { %532 = vadd.xlane.f32.xlu0 %v476_v50  ;;  %1843 = vst [vmem:[#allocation5 + $0x70] sm:$0xff] %v268_v36   ;;  %v444_v17 = vunpack.c.l.bf16 %v268_v36  ;;  %v2612_v11 = vmul.f32 %v2217_v39, %v440_v26  ;;  %v2616_v8 = vmul.f32 %v2226_v47, %v2285_v60  ;;  %v2620_v12 = vmul.f32 %v2226_v47, %v2287_v61 }
  0xf1   :  { %3223 = vst [vmem:[#allocation49_spill] sm:$0xff] %v2608_v0  ;;  %v2624_v0 = vmul.f32 %v2226_v47, %v2501_v13  ;;  %v2628_v14 = vmul.f32 %v2226_v47, %v2503_v43  ;;  %v481_v50 = vmul.f32 %v2215_v30, %v445_v49  ;;  %v269_v62 = vpack.c.bf16 %v253_v27, %v252_v15 }
  0xf2   :  { %v480_v5 = vmul.f32 %v2215_v30, %v444_v17  ;;  %v2633_v60 = vmul.f32 %v2158_v48, %v445_v49  ;;  %v2636_v36 = vmul.f32 %v2158_v48, %v444_v17  ;;  %v2639_v61 = vmul.f32 %v2217_v39, %v443_v24 }
  0xf3   :  { %3224 = vst [vmem:[#allocation50_spill] sm:$0xff] %v2624_v0  ;;  %3225 = vst [vmem:[#allocation51_spill] sm:$0xff] %v2628_v14  ;;  %v2642_v13 = vmul.f32 %v2217_v39, %v442_v29  ;;  %v2646_v43 = vmul.f32 %v2226_v47, %v2323_v4  ;;  %538 = vadd.xlane.f32.xlu1 %v479_v35  ;;  %v447_v14 = vunpack.c.h.bf16 %v269_v62  ;;  %v446_v15 = vunpack.c.l.bf16 %v269_v62 }
  0xf4   :  { %3226 = vst [vmem:[#allocation52_spill] sm:$0xff] %v2639_v61  ;;  %536 = vadd.xlane.f32.xlu0 %v478_v42  ;;  %1844 = vst [vmem:[#allocation5 + $0x78] sm:$0xff] %v269_v62   ;;  %v2650_v27 = vmul.f32 %v2226_v47, %v2325_v56  ;;  %v2654_v0 = vmul.f32 %v2226_v47, %v2535_v7  ;;  %v2657_v61 = vmul.f32 %v2226_v47, %v440_v26 }
  0xf5   :  { %3227 = vst [vmem:[#allocation53_spill] sm:$0xff] %v2642_v13  ;;  %v2660_v13 = vmul.f32 %v2217_v39, %v445_v49  ;;  %v2663_v4 = vmul.f32 %v2217_v39, %v444_v17  ;;  %v2667_v35 = vmul.f32 %v2226_v47, %v2345_v52  ;;  %v483_v56 = vmul.f32 %v2215_v30, %v447_v14 }
  0xf6   :  { %v482_v42 = vmul.f32 %v2215_v30, %v446_v15  ;;  %v789_v7 = vmul.f32 %v2158_v48, %v447_v14  ;;  %v788_v62 = vmul.f32 %v2158_v48, %v446_v15  ;;  %v2675_v26 = vmul.f32 %v2226_v47, %v2347_v34 }
  0xf7   :  { %3228 = vst [vmem:[#allocation54_spill] sm:$0xff] %v2660_v13  ;;  %3229 = vst [vmem:[#allocation55_spill] sm:$0xff] %v2663_v4  ;;  %v2678_v13 = vmul.f32 %v2226_v47, %v443_v24  ;;  %v2681_v4 = vmul.f32 %v2226_v47, %v442_v29  ;;  %v2684_v52 = vmul.f32 %v2217_v39, %v447_v14  ;;  %542 = vadd.xlane.f32.xlu1 %v481_v50 }
  0xf8   :  { %540 = vadd.xlane.f32.xlu0 %v480_v5  ;;  %v2687_v30 = vmul.f32 %v2217_v39, %v446_v15  ;;  %v2691_v48 = vmul.f32 %v2226_v47, %v2379_v46  ;;  %v2695_v34 = vmul.f32 %v2226_v47, %v2381_v22  ;;  %v2698_v24 = vmul.f32 %v2226_v47, %v445_v49  ;;  %v3249_v49 = vld [vmem:[#allocation28_spill] sm:$0xff]  ;;  %v3250_v5 = vld [vmem:[#allocation31_spill] sm:$0xff] }
  0xf9   :  { %v2701_v29 = vmul.f32 %v2226_v47, %v444_v17  ;;  %v2705_v50 = vmul.f32 %v2226_v47, %v2397_v10  ;;  %v2709_v39 = vmul.f32 %v2226_v47, %v2399_v25  ;;  %v2712_v46 = vmul.f32 %v2226_v47, %v447_v14 }
  0xfa   :  { %v2715_v22 = vmul.f32 %v2226_v47, %v446_v15  ;;  %v3230_v47 = vld [vmem:[#allocation29_spill] sm:$0xff] }
  0xfb   :  { %546 = vadd.xlane.f32.xlu1 %v483_v56  ;;  %v3252_v56 = vld [vmem:[#allocation13_spill] sm:$0xff] }
  0xfc   :  { %544 = vadd.xlane.f32.xlu0 %v482_v42 }
  0xff   :  { %792 = vadd.xlane.f32.xlu1 %v2248_v18  ;;  %v3232_v18 = vld [vmem:[#allocation33_spill] sm:$0xff] }
 0x100   :  { %790 = vadd.xlane.f32.xlu0 %v2252_v19  ;;  %v3233_v19 = vld [vmem:[#allocation34_spill] sm:$0xff] }
 0x103   :  { %796 = vadd.xlane.f32.xlu1 %v2239_v41  ;;  %v3231_v41 = vld [vmem:[#allocation30_spill] sm:$0xff] }
 0x104   :  { %794 = vadd.xlane.f32.xlu0 %v2257_v23  ;;  %v3234_v23 = vld [vmem:[#allocation37_spill] sm:$0xff] }
 0x107   :  { %800 = vadd.xlane.f32.xlu1 %v2282_v9  ;;  %v3235_v9 = vld [vmem:[#allocation38_spill] sm:$0xff] }
 0x108   :  { %798 = vadd.xlane.f32.xlu0 %v2291_v6  ;;  %v3236_v6 = vld [vmem:[#allocation14_spill] sm:$0xff] }
 0x10b   :  { %804 = vadd.xlane.f32.xlu1 %v2308_v38  ;;  %v3237_v38 = vld [vmem:[#allocation15_spill] sm:$0xff] }
 0x10c   :  { %802 = vadd.xlane.f32.xlu0 %v2312_v2  ;;  %v3238_v2 = vld [vmem:[#allocation16_spill] sm:$0xff] }
 0x10f   :  { %808 = vadd.xlane.f32.xlu1 %v2342_v21  ;;  %v3240_v21 = vld [vmem:[#allocation18_spill] sm:$0xff] }
 0x110   :  { %806 = vadd.xlane.f32.xlu0 %v2351_v44  ;;  %v3241_v44 = vld [vmem:[#allocation19_spill] sm:$0xff] }
 0x113   :  { %812 = vadd.xlane.f32.xlu1 %v2366_v16  ;;  %v3239_v16 = vld [vmem:[#allocation17_spill] sm:$0xff] }
 0x114   :  { %810 = vadd.xlane.f32.xlu0 %v2370_v55  ;;  %v3242_v55 = vld [vmem:[#allocation20_spill] sm:$0xff] }
 0x117   :  { %816 = vadd.xlane.f32.xlu1 %v2394_v3  ;;  %v3243_v3 = vld [vmem:[#allocation21_spill] sm:$0xff] }
 0x118   :  { %814 = vadd.xlane.f32.xlu0 %v2403_v45  ;;  %v3244_v45 = vld [vmem:[#allocation23_spill] sm:$0xff] }
 0x11b   :  { %820 = vadd.xlane.f32.xlu1 %v3230_v47  ;;  %v3254_v47 = vld [vmem:[#allocation35_spill] sm:$0xff] }
 0x11c   :  { %818 = vadd.xlane.f32.xlu0 %v3231_v41  ;;  %v3255_v41 = vld [vmem:[#allocation36_spill] sm:$0xff] }
 0x11f   :  { %824 = vadd.xlane.f32.xlu1 %v3232_v18 }
 0x120   :  { %822 = vadd.xlane.f32.xlu0 %v3233_v19 }
 0x123   :  { %828 = vadd.xlane.f32.xlu1 %v3234_v23 }
 0x124   :  { %826 = vadd.xlane.f32.xlu0 %v3235_v9 }
 0x127   :  { %832 = vadd.xlane.f32.xlu1 %v2498_v37  ;;  %v3245_v37 = vld [vmem:[#allocation24_spill] sm:$0xff] }
 0x128   :  { %830 = vadd.xlane.f32.xlu0 %v2507_v53 }
 0x12b   :  { %836 = vadd.xlane.f32.xlu1 %v2521_v20 }
 0x12c   :  { %834 = vadd.xlane.f32.xlu0 %v2528_v59  ;;  %v3246_v59 = vld [vmem:[#allocation25_spill] sm:$0xff] }
 0x12f   :  { %840 = vadd.xlane.f32.xlu1 %v2561_v51  ;;  %v3247_v51 = vld [vmem:[#allocation26_spill] sm:$0xff] }
 0x130   :  { %838 = vadd.xlane.f32.xlu0 %v2566_v1 }
 0x133   :  { %844 = vadd.xlane.f32.xlu1 %v2596_v40  ;;  %v3248_v40 = vld [vmem:[#allocation27_spill] sm:$0xff] }
 0x134   :  { %842 = vadd.xlane.f32.xlu0 %v2600_v32 }
 0x137   :  { %848 = vadd.xlane.f32.xlu1 %v2633_v60  ;;  %v3251_v60 = vld [vmem:[#allocation32_spill] sm:$0xff] }
 0x138   :  { %846 = vadd.xlane.f32.xlu0 %v2636_v36 }
 0x13b   :  { %852 = vadd.xlane.f32.xlu1 %v789_v7  ;;  %v3253_v7 = vld [vmem:[#allocation12_spill] sm:$0xff] }
 0x13c   :  { %850 = vadd.xlane.f32.xlu0 %v788_v62 }
 0x13f   :  { %1086 = vadd.xlane.f32.xlu1 %v3236_v6 }
 0x140   :  { %1084 = vadd.xlane.f32.xlu0 %v3237_v38 }
 0x143   :  { %1090 = vadd.xlane.f32.xlu1 %v3238_v2 }
 0x144   :  { %1088 = vadd.xlane.f32.xlu0 %v3239_v16 }
 0x147   :  { %1094 = vadd.xlane.f32.xlu1 %v3240_v21 }
 0x148   :  { %1092 = vadd.xlane.f32.xlu0 %v3241_v44 }
 0x14b   :  { %1098 = vadd.xlane.f32.xlu1 %v3242_v55 }
 0x14c   :  { %1096 = vadd.xlane.f32.xlu0 %v3243_v3  ;;  %v487_v10 = vpop.xlane.xlu1 %486  ;;  %v485_v25 = vpop.xlane.xlu0 %484 }
 0x14d   :  { %v590_v6 = vrot.slane %v487_v10, %v3252_v56  ;;  %v585_v38 = vrot.slane %v485_v25, %v3253_v7  ;;  %v3257_v10 = vld [vmem:[#allocation40_spill] sm:$0xff] }
 0x14f   :  { %1102 = vadd.xlane.f32.xlu1 %v3244_v45 }
 0x150   :  { %1100 = vadd.xlane.f32.xlu0 %v3245_v37  ;;  %v491_v53 = vpop.xlane.xlu1 %490  ;;  %v489_v20 = vpop.xlane.xlu0 %488  ;;  %v3256_v37 = vld [vmem:[#allocation39_spill] sm:$0xff] }
 0x151   :  { %v600_v42 = vrot.slane %v491_v53, %v3252_v56  ;;  %v596_v62 = vrot.slane %v489_v20, %v3253_v7 }
 0x153   :  { %1106 = vadd.xlane.f32.xlu1 %v3246_v59  ;;  %v601_v55 = vsel %vm591_vm0, %v600_v42, %v596_v62  ;;  %v592_v59 = vsel %vm591_vm0, %v590_v6, %v585_v38  ;;  %v3260_v6 = vld [vmem:[#allocation22_spill] sm:$0xff] }
 0x154   :  { %1104 = vadd.xlane.f32.xlu0 %v3247_v51  ;;  %v495_v1 = vpop.xlane.xlu1 %494  ;;  %v493_v32 = vpop.xlane.xlu0 %492 }
 0x155   :  { %v609_v18 = vrot.slane %v495_v1, %v3252_v56  ;;  %v605_v19 = vrot.slane %v493_v32, %v3253_v7 }
 0x157   :  { %1110 = vadd.xlane.f32.xlu1 %v3248_v40  ;;  %v610_v25 = vsel %vm591_vm0, %v609_v18, %v605_v19  ;;  %v729_v40 = vsel %vm728_vm1, %v601_v55, %v592_v59  ;;  %v3261_v55 = vld [vmem:[#allocation43_spill] sm:$0xff] }
 0x158   :  { %1108 = vadd.xlane.f32.xlu0 %v3249_v49  ;;  %v499_v17 = vpop.xlane.xlu1 %498  ;;  %v497_v14 = vpop.xlane.xlu0 %496 }
 0x159   :  { %v618_v2 = vrot.slane %v499_v17, %v3252_v56  ;;  %v614_v16 = vrot.slane %v497_v14, %v3253_v7  ;;  %v731_v17 = vsel %vm730_vm2, %v610_v25, %v729_v40 }
 0x15b   :  { %1114 = vadd.xlane.f32.xlu1 %v3250_v5  ;;  %v619_v51 = vsel %vm591_vm0, %v618_v2, %v614_v16  ;;  %v3258_v5 = vld [vmem:[#allocation41_spill] sm:$0xff] }
 0x15c   :  { %1112 = vadd.xlane.f32.xlu0 %v3251_v60  ;;  %v503_v36 = vpop.xlane.xlu1 %502  ;;  %v501_v15 = vpop.xlane.xlu0 %500  ;;  %v3259_v60 = vld [vmem:[#allocation42_spill] sm:$0xff] }
 0x15d   :  { %v627_v21 = vrot.slane %v503_v36, %v3252_v56  ;;  %v623_v44 = vrot.slane %v501_v15, %v3253_v7  ;;  %v733_v36 = vsel %vm732_vm3, %v619_v51, %v731_v17  ;;  %v3265_v51 = vld [vmem:[#allocation47_spill] sm:$0xff] }
 0x15f   :  { %1118 = vadd.xlane.f32.xlu1 %v3254_v47  ;;  %v628_v49 = vsel %vm591_vm0, %v627_v21, %v623_v44 }
 0x160   :  { %1116 = vadd.xlane.f32.xlu0 %v3255_v41  ;;  %v507_v23 = vpop.xlane.xlu1 %506  ;;  %v505_v9 = vpop.xlane.xlu0 %504  ;;  %v735_v47 = vsel %vm734_vm4, %v628_v49, %v733_v36 }
 0x161   :  { %v636_v3 = vrot.slane %v507_v23, %v3252_v56  ;;  %v632_v45 = vrot.slane %v505_v9, %v3253_v7 }
 0x163   :  { %1122 = vadd.xlane.f32.xlu1 %v3256_v37  ;;  %v637_v14 = vsel %vm591_vm0, %v636_v3, %v632_v45  ;;  %v3262_v3 = vld [vmem:[#allocation44_spill] sm:$0xff] }
 0x164   :  { %1120 = vadd.xlane.f32.xlu0 %v3257_v10  ;;  %v511_v53 = vpop.xlane.xlu1 %510  ;;  %v509_v20 = vpop.xlane.xlu0 %508  ;;  %v737_v19 = vsel %vm736_vm5, %v637_v14, %v735_v47  ;;  %v3263_v10 = vld [vmem:[#allocation45_spill] sm:$0xff] }
 0x165   :  { %v645_v1 = vrot.slane %v511_v53, %v3252_v56  ;;  %v641_v32 = vrot.slane %v509_v20, %v3253_v7  ;;  %v3264_v53 = vld [vmem:[#allocation46_spill] sm:$0xff] }
 0x167   :  { %1126 = vadd.xlane.f32.xlu1 %v3258_v5  ;;  %v646_v15 = vsel %vm591_vm0, %v645_v1, %v641_v32 }
 0x168   :  { %1124 = vadd.xlane.f32.xlu0 %v3259_v60  ;;  %v515_v42 = vpop.xlane.xlu1 %514  ;;  %v513_v62 = vpop.xlane.xlu0 %512  ;;  %v739_v23 = vsel %vm738_vm6, %v646_v15, %v737_v19 }
 0x169   :  { %v654_v41 = vrot.slane %v515_v42, %v3252_v56  ;;  %v650_v18 = vrot.slane %v513_v62, %v3253_v7  ;;  %v3266_v42 = vld [vmem:[#allocation48_spill] sm:$0xff] }
 0x16b   :  { %v655_v9 = vsel %vm591_vm0, %v654_v41, %v650_v18  ;;  %1379 = vadd.xlane.f32.xlu1 %v3260_v6 }
 0x16c   :  { %1128 = vadd.xlane.f32.xlu0 %v2532_v54  ;;  %v741_v38 = vsel %vm740_vm7, %v655_v9, %v739_v23  ;;  %v519_v2 = vpop.xlane.xlu1 %518  ;;  %v517_v16 = vpop.xlane.xlu0 %516 }
 0x16d   :  { %752 = vst.msk [vmem:[#allocation6] sm:$0xff] %vm751_vm8, %v741_v38  ;;  %v659_v49 = vrot.slane %v517_v16, %v3253_v7  ;;  %v3267_v16 = vld [vmem:[#allocation49_spill] sm:$0xff] }
 0x16f   :  { %1383 = vadd.xlane.f32.xlu1 %v2539_v57 }
 0x170   :  { %1381 = vadd.xlane.f32.xlu0 %v2543_v28  ;;  %v523_v21 = vpop.xlane.xlu1 %522  ;;  %v521_v44 = vpop.xlane.xlu0 %520 }
 0x171   :  { %v672_v20 = vrot.slane %v523_v21, %v3252_v56  ;;  %v668_v59 = vrot.slane %v521_v44, %v3253_v7 }
 0x173   :  { %1411 = vadd.xlane.f32.xlu1 %v3261_v55 }
 0x174   :  { %1385 = vadd.xlane.f32.xlu0 %v3262_v3  ;;  %v527_v45 = vpop.xlane.xlu1 %526  ;;  %v525_v37 = vpop.xlane.xlu0 %524 }
 0x175   :  { %v681_v1 = vrot.slane %v527_v45, %v3252_v56 }
 0x177   :  { %1415 = vadd.xlane.f32.xlu1 %v3263_v10 }
 0x178   :  { %1413 = vadd.xlane.f32.xlu0 %v2570_v33  ;;  %v531_v54 = vpop.xlane.xlu1 %530  ;;  %v529_v25 = vpop.xlane.xlu0 %528  ;;  %v677_v33 = vrot.slane %v525_v37, %v3253_v7 }
 0x179   :  { %v690_v17 = vrot.slane %v531_v54, %v3252_v56  ;;  %v686_v14 = vrot.slane %v529_v25, %v3253_v7 }
 0x17a   :  { %v682_v62 = vsel %vm591_vm0, %v681_v1, %v677_v33  ;;  %v3270_v33 = vld [vmem:[#allocation52_spill] sm:$0xff] }
 0x17b   :  { %1130 = vadd.xlane.f32.xlu1 %v2575_v58  ;;  %v663_v58 = vrot.slane %v519_v2, %v3252_v56  ;;  %v691_v19 = vsel %vm591_vm0, %v690_v17, %v686_v14 }
 0x17c   :  { %1417 = vadd.xlane.f32.xlu0 %v3264_v53  ;;  %v535_v57 = vpop.xlane.xlu1 %534 }
 0x17d   :  { %v533_v28 = vpop.xlane.xlu0 %532  ;;  %v699_v5 = vrot.slane %v535_v57, %v3252_v56  ;;  %v664_v18 = vsel %vm591_vm0, %v663_v58, %v659_v49 }
 0x17e   :  { %v695_v60 = vrot.slane %v533_v28, %v3253_v7 }
 0x17f   :  { %1389 = vadd.xlane.f32.xlu1 %v3265_v51 }
 0x180   :  { %1387 = vadd.xlane.f32.xlu0 %v2587_v63  ;;  %v539_v32 = vpop.xlane.xlu1 %538  ;;  %v673_v63 = vsel %vm591_vm0, %v672_v20, %v668_v59  ;;  %v700_v38 = vsel %vm591_vm0, %v699_v5, %v695_v60  ;;  %v3268_v20 = vld [vmem:[#allocation50_spill] sm:$0xff]  ;;  %v3269_v59 = vld [vmem:[#allocation51_spill] sm:$0xff] }
 0x181   :  { %v537_v40 = vpop.xlane.xlu0 %536  ;;  %v708_v36 = vrot.slane %v539_v32, %v3252_v56  ;;  %v742_v6 = vsel %vm728_vm1, %v673_v63, %v664_v18  ;;  %v3271_v32 = vld [vmem:[#allocation53_spill] sm:$0xff]  ;;  %v3272_v60 = vld [vmem:[#allocation54_spill] sm:$0xff]  ;;  %v3273_v63 = vld [vmem:[#allocation55_spill] sm:$0xff] }
 0x182   :  { %v704_v15 = vrot.slane %v537_v40, %v3253_v7  ;;  %v743_v2 = vsel %vm730_vm2, %v682_v62, %v742_v6 }
 0x183   :  { %1421 = vadd.xlane.f32.xlu1 %v3266_v42  ;;  %v744_v21 = vsel %vm732_vm3, %v691_v19, %v743_v2 }
 0x184   :  { %1419 = vadd.xlane.f32.xlu0 %v2604_v31  ;;  %v543_v47 = vpop.xlane.xlu1 %542  ;;  %v709_v31 = vsel %vm591_vm0, %v708_v36, %v704_v15  ;;  %v745_v45 = vsel %vm734_vm4, %v700_v38, %v744_v21 }
 0x185   :  { %v541_v41 = vpop.xlane.xlu0 %540  ;;  %v717_v23 = vrot.slane %v543_v47, %v3252_v56  ;;  %v746_v54 = vsel %vm736_vm5, %v709_v31, %v745_v45 }
 0x186   :  { %v713_v9 = vrot.slane %v541_v41, %v3253_v7 }
 0x187   :  { %1134 = vadd.xlane.f32.xlu1 %v3267_v16 }
 0x188   :  { %1132 = vadd.xlane.f32.xlu0 %v2612_v11  ;;  %v718_v44 = vsel %vm591_vm0, %v717_v23, %v713_v9  ;;  %v547_v55 = vpop.xlane.xlu1 %546 }
 0x189   :  { %v545_v3 = vpop.xlane.xlu0 %544  ;;  %v726_v37 = vrot.slane %v547_v55, %v3252_v56  ;;  %v747_v25 = vsel %vm738_vm6, %v718_v44, %v746_v54 }
 0x18a   :  { %v722_v10 = vrot.slane %v545_v3, %v3253_v7 }
 0x18b   :  { %1393 = vadd.xlane.f32.xlu1 %v2616_v8 }
 0x18c   :  { %v727_v53 = vsel %vm591_vm0, %v726_v37, %v722_v10  ;;  %1391 = vadd.xlane.f32.xlu0 %v2620_v12  ;;  %v793_v57 = vpop.xlane.xlu1 %792 }
 0x18d   :  { %v748_v11 = vsel %vm740_vm7, %v727_v53, %v747_v25  ;;  %v791_v28 = vpop.xlane.xlu0 %790 }
 0x18e   :  { %753 = vst.msk [vmem:[#allocation6 + $0x8] sm:$0xff] %vm751_vm8, %v748_v11 }
 0x18f   :  { %1425 = vadd.xlane.f32.xlu1 %v3268_v20 }
 0x190   :  { %1423 = vadd.xlane.f32.xlu0 %v3269_v59  ;;  %v797_v51 = vpop.xlane.xlu1 %796 }
 0x191   :  { %v795_v1 = vpop.xlane.xlu0 %794  ;;  %v902_v14 = vrot.slane %v797_v51, %v3252_v56 }
 0x192   :  { %v898_v5 = vrot.slane %v795_v1, %v3253_v7 }
 0x193   :  { %1138 = vadd.xlane.f32.xlu1 %v3270_v33 }
 0x194   :  { %1136 = vadd.xlane.f32.xlu0 %v3271_v32  ;;  %v801_v40 = vpop.xlane.xlu1 %800  ;;  %v903_v18 = vsel %vm591_vm0, %v902_v14, %v898_v5 }
 0x195   :  { %v799_v8 = vpop.xlane.xlu0 %798 }
 0x197   :  { %1397 = vadd.xlane.f32.xlu1 %v2646_v43  ;;  %v911_v43 = vrot.slane %v801_v40, %v3252_v56 }
 0x198   :  { %1395 = vadd.xlane.f32.xlu0 %v2650_v27  ;;  %v805_v12 = vpop.xlane.xlu1 %804  ;;  %v907_v27 = vrot.slane %v799_v8, %v3253_v7 }
 0x199   :  { %v803_v58 = vpop.xlane.xlu0 %802  ;;  %v920_v42 = vrot.slane %v805_v12, %v3252_v56 }
 0x19a   :  { %v916_v62 = vrot.slane %v803_v58, %v3253_v7  ;;  %v912_v9 = vsel %vm591_vm0, %v911_v43, %v907_v27 }
 0x19b   :  { %1429 = vadd.xlane.f32.xlu1 %v2654_v0  ;;  %v893_v0 = vrot.slane %v793_v57, %v3252_v56 }
 0x19c   :  { %1427 = vadd.xlane.f32.xlu0 %v2657_v61  ;;  %v809_v49 = vpop.xlane.xlu1 %808  ;;  %v889_v61 = vrot.slane %v791_v28, %v3253_v7  ;;  %v921_v31 = vsel %vm591_vm0, %v920_v42, %v916_v62 }
 0x19d   :  { %v807_v17 = vpop.xlane.xlu0 %806  ;;  %v929_v47 = vrot.slane %v809_v49, %v3252_v56 }
 0x19e   :  { %v925_v41 = vrot.slane %v807_v17, %v3253_v7  ;;  %v894_v2 = vsel %vm591_vm0, %v893_v0, %v889_v61 }
 0x19f   :  { %1142 = vadd.xlane.f32.xlu1 %v3272_v60  ;;  %v1030_v44 = vsel %vm728_vm1, %v903_v18, %v894_v2 }
 0x1a0   :  { %1140 = vadd.xlane.f32.xlu0 %v3273_v63  ;;  %v813_v36 = vpop.xlane.xlu1 %812  ;;  %v930_v55 = vsel %vm591_vm0, %v929_v47, %v925_v41 }
 0x1a1   :  { %v811_v15 = vpop.xlane.xlu0 %810  ;;  %v938_v19 = vrot.slane %v813_v36, %v3252_v56 }
 0x1a2   :  { %v934_v23 = vrot.slane %v811_v15, %v3253_v7 }
 0x1a3   :  { %1401 = vadd.xlane.f32.xlu1 %v2667_v35  ;;  %v1031_v35 = vsel %vm730_vm2, %v912_v9, %v1030_v44 }
 0x1a4   :  { %1399 = vadd.xlane.f32.xlu0 %v2675_v26  ;;  %v817_v6 = vpop.xlane.xlu1 %816  ;;  %v939_v26 = vsel %vm591_vm0, %v938_v19, %v934_v23  ;;  %v1032_v3 = vsel %vm732_vm3, %v921_v31, %v1031_v35 }
 0x1a5   :  { %v815_v38 = vpop.xlane.xlu0 %814  ;;  %v947_v16 = vrot.slane %v817_v6, %v3252_v56  ;;  %v1033_v54 = vsel %vm734_vm4, %v930_v55, %v1032_v3 }
 0x1a6   :  { %v943_v21 = vrot.slane %v815_v38, %v3253_v7  ;;  %v1034_v11 = vsel %vm736_vm5, %v939_v26, %v1033_v54 }
 0x1a7   :  { %1433 = vadd.xlane.f32.xlu1 %v2678_v13 }
 0x1a8   :  { %1431 = vadd.xlane.f32.xlu0 %v2681_v4  ;;  %v948_v45 = vsel %vm591_vm0, %v947_v16, %v943_v21  ;;  %v821_v37 = vpop.xlane.xlu1 %820 }
 0x1a9   :  { %v819_v10 = vpop.xlane.xlu0 %818  ;;  %v956_v25 = vrot.slane %v821_v37, %v3252_v56  ;;  %v1035_v57 = vsel %vm738_vm6, %v948_v45, %v1034_v11 }
 0x1aa   :  { %v952_v53 = vrot.slane %v819_v10, %v3253_v7 }
 0x1ab   :  { %1146 = vadd.xlane.f32.xlu1 %v2684_v52 }
 0x1ac   :  { %v957_v13 = vsel %vm591_vm0, %v956_v25, %v952_v53  ;;  %1144 = vadd.xlane.f32.xlu0 %v2687_v30  ;;  %v825_v28 = vpop.xlane.xlu1 %824 }
 0x1ad   :  { %v1036_v4 = vsel %vm740_vm7, %v957_v13, %v1035_v57  ;;  %v823_v20 = vpop.xlane.xlu0 %822 }
 0x1ae   :  { %1046 = vst.msk [vmem:[#allocation8] sm:$0xff] %vm751_vm8, %v1036_v4  ;;  %v961_v12 = vrot.slane %v823_v20, %v3253_v7 }
 0x1af   :  { %1405 = vadd.xlane.f32.xlu1 %v2691_v48 }
 0x1b0   :  { %1403 = vadd.xlane.f32.xlu0 %v2695_v34  ;;  %v829_v59 = vpop.xlane.xlu1 %828 }
 0x1b1   :  { %v827_v51 = vpop.xlane.xlu0 %826  ;;  %v974_v32 = vrot.slane %v829_v59, %v3252_v56 }
 0x1b3   :  { %1437 = vadd.xlane.f32.xlu1 %v2698_v24  ;;  %v970_v24 = vrot.slane %v827_v51, %v3253_v7 }
 0x1b4   :  { %1435 = vadd.xlane.f32.xlu0 %v2701_v29  ;;  %v833_v1 = vpop.xlane.xlu1 %832 }
 0x1b5   :  { %v831_v52 = vpop.xlane.xlu0 %830  ;;  %v983_v29 = vrot.slane %v833_v1, %v3252_v56  ;;  %v975_v17 = vsel %vm591_vm0, %v974_v32, %v970_v24 }
 0x1b6   :  { %v979_v40 = vrot.slane %v831_v52, %v3253_v7 }
 0x1b7   :  { %1409 = vadd.xlane.f32.xlu1 %v2705_v50 }
 0x1b8   :  { %1407 = vadd.xlane.f32.xlu0 %v2709_v39  ;;  %v837_v30 = vpop.xlane.xlu1 %836  ;;  %v965_v39 = vrot.slane %v825_v28, %v3252_v56  ;;  %v984_v60 = vsel %vm591_vm0, %v983_v29, %v979_v40 }
 0x1b9   :  { %v835_v33 = vpop.xlane.xlu0 %834 }
 0x1ba   :  { %v966_v27 = vsel %vm591_vm0, %v965_v39, %v961_v12 }
 0x1bb   :  { %1441 = vadd.xlane.f32.xlu1 %v2712_v46  ;;  %v992_v46 = vrot.slane %v837_v30, %v3252_v56  ;;  %v1037_v61 = vsel %vm728_vm1, %v975_v17, %v966_v27 }
 0x1bc   :  { %1439 = vadd.xlane.f32.xlu0 %v2715_v22  ;;  %v841_v48 = vpop.xlane.xlu1 %840  ;;  %v988_v22 = vrot.slane %v835_v33, %v3253_v7  ;;  %v1038_v62 = vsel %vm730_vm2, %v984_v60, %v1037_v61 }
 0x1bd   :  { %v839_v34 = vpop.xlane.xlu0 %838  ;;  %v1001_v58 = vrot.slane %v841_v48, %v3252_v56 }
 0x1be   :  { %v997_v49 = vrot.slane %v839_v34, %v3253_v7  ;;  %v993_v36 = vsel %vm591_vm0, %v992_v46, %v988_v22 }
 0x1bf   :  { %v1039_v41 = vsel %vm732_vm3, %v993_v36, %v1038_v62 }
 0x1c0   :  { %v845_v8 = vpop.xlane.xlu1 %844  ;;  %v1002_v42 = vsel %vm591_vm0, %v1001_v58, %v997_v49 }
 0x1c1   :  { %v843_v50 = vpop.xlane.xlu0 %842  ;;  %v1010_v14 = vrot.slane %v845_v8, %v3252_v56  ;;  %v1040_v9 = vsel %vm734_vm4, %v1002_v42, %v1039_v41 }
 0x1c2   :  { %v1006_v5 = vrot.slane %v843_v50, %v3253_v7 }
 0x1c4   :  { %v849_v63 = vpop.xlane.xlu1 %848  ;;  %v1011_v47 = vsel %vm591_vm0, %v1010_v14, %v1006_v5 }
 0x1c5   :  { %v847_v43 = vpop.xlane.xlu0 %846  ;;  %v1019_v15 = vrot.slane %v849_v63, %v3252_v56  ;;  %v1041_v2 = vsel %vm736_vm5, %v1011_v47, %v1040_v9 }
 0x1c6   :  { %v1015_v0 = vrot.slane %v847_v43, %v3253_v7 }
 0x1c8   :  { %v1020_v18 = vsel %vm591_vm0, %v1019_v15, %v1015_v0  ;;  %v853_v19 = vpop.xlane.xlu1 %852 }
 0x1c9   :  { %v851_v23 = vpop.xlane.xlu0 %850  ;;  %v1028_v6 = vrot.slane %v853_v19, %v3252_v56  ;;  %v1042_v31 = vsel %vm738_vm6, %v1020_v18, %v1041_v2 }
 0x1ca   :  { %v1024_v38 = vrot.slane %v851_v23, %v3253_v7 }
 0x1cc   :  { %v1029_v16 = vsel %vm591_vm0, %v1028_v6, %v1024_v38  ;;  %v1087_v44 = vpop.xlane.xlu1 %1086 }
 0x1cd   :  { %v1043_v21 = vsel %vm740_vm7, %v1029_v16, %v1042_v31  ;;  %v1085_v55 = vpop.xlane.xlu0 %1084 }
 0x1ce   :  { %1047 = vst.msk [vmem:[#allocation8 + $0x8] sm:$0xff] %vm751_vm8, %v1043_v21 }
 0x1d0   :  { %v1091_v35 = vpop.xlane.xlu1 %1090 }
 0x1d1   :  { %v1089_v26 = vpop.xlane.xlu0 %1088 }
 0x1d2   :  { %1950 = shalt.err (!%p1947_p12)
}
 0x1d3   :  { %s1951_s10 = scalar_lea.hbm %s3181_s2, 2048 }
 0x1d4   :  { %p1952_p13 = scmp.ne.s32.totalorder %s3181_s2, %s1951_s10  ;;  %p1955_p0 = scmp.lt.u32.totalorder %s1951_s10, %s3181_s2 }
 0x1d6   :  { %p1957_p1 = pnand %p1955_p0, %p1952_p13 }
 0x1d8   :  { %1960 = shalt.err (!%p1957_p1)
}
 0x1d9   :  { %s2015_s15 = smov 64   ;;  %s2016_s16 = smov 4   ;;  %v1095_v3 = vpop.xlane.xlu1 %1094  ;;  %v1093_v45 = vpop.xlane.xlu0 %1092  ;;  %v1196_v53 = vrot.slane %v1091_v35, %v3252_v56  ;;  %v1192_v11 = vrot.slane %v1089_v26, %v3253_v7  ;;  %v1187_v20 = vrot.slane %v1087_v44, %v3252_v56  ;;  %v1183_v59 = vrot.slane %v1085_v55, %v3253_v7 }
 0x1da   :  { %1649 = dma.vmem_to_hbm [thread:$0]  %s1644_s6, 2048, %s3181_s2, [#allocation4], %s2015_s15, %s2015_s15, %s2016_s16   ;;  %v1205_v57 = vrot.slane %v1095_v3, %v3252_v56  ;;  %v1201_v13 = vrot.slane %v1093_v45, %v3253_v7 }
 0x1db   :  { %v1197_v33 = vsel %vm591_vm0, %v1196_v53, %v1192_v11  ;;  %v1188_v40 = vsel %vm591_vm0, %v1187_v20, %v1183_v59  ;;  %s2017_s2 = smov [#allocation6]  }
 0x1dc   :  { %v1206_v32 = vsel %vm591_vm0, %v1205_v57, %v1201_v13  ;;  %v1324_v12 = vsel %vm728_vm1, %v1197_v33, %v1188_v40  ;;  %s1655_s19 = sshll.u32 %s2017_s2, 4  ;;  %s3066_s19 = int_to_ptr.vmem [resolvable:$true] %s1655_s19 }
 0x1dd   :  { %v1099_v37 = vpop.xlane.xlu1 %1098  ;;  %v1097_v10 = vpop.xlane.xlu0 %1096  ;;  %v1325_v22 = vsel %vm730_vm2, %v1206_v32, %v1324_v12  ;;  %s1961_s20 = scalar_lea.vmem %s3066_s19, 512  ;;  %p1966_p3 = scmp.lt.s32.totalorder %s3066_s19, %s3066_s19 }
 0x1de   :  { %v1214_v51 = vrot.slane %v1099_v37, %v3252_v56  ;;  %v1210_v1 = vrot.slane %v1097_v10, %v3253_v7  ;;  %p1962_p2 = scmp.ne.s32.totalorder %s3066_s19, %s1961_s20  ;;  %p1967_p4 = scmp.lt.s32.totalorder %s1961_s20, %s1961_s20 }
 0x1e0   :  { %v1215_v8 = vsel %vm591_vm0, %v1214_v51, %v1210_v1  ;;  %p1968_p5 = por %p1967_p4, %p1966_p3 }
 0x1e1   :  { %v1103_v54 = vpop.xlane.xlu1 %1102  ;;  %v1101_v25 = vpop.xlane.xlu0 %1100  ;;  %v1326_v49 = vsel %vm732_vm3, %v1215_v8, %v1325_v22 }
 0x1e2   :  { %v1223_v52 = vrot.slane %v1103_v54, %v3252_v56  ;;  %v1219_v30 = vrot.slane %v1101_v25, %v3253_v7  ;;  %p1969_p6 = pnand %p1968_p5, %p1962_p2 }
 0x1e4   :  { %v1224_v46 = vsel %vm591_vm0, %v1223_v52, %v1219_v30 }
 0x1e5   :  { %v1107_v4 = vpop.xlane.xlu1 %1106  ;;  %v1105_v28 = vpop.xlane.xlu0 %1104  ;;  %v1327_v60 = vsel %vm734_vm4, %v1224_v46, %v1326_v49 }
 0x1e6   :  { %v1232_v48 = vrot.slane %v1107_v4, %v3252_v56  ;;  %v1228_v34 = vrot.slane %v1105_v28, %v3253_v7 }
 0x1e8   :  { %v1233_v58 = vsel %vm591_vm0, %v1232_v48, %v1228_v34 }
 0x1e9   :  { %v1111_v24 = vpop.xlane.xlu1 %1110  ;;  %v1109_v29 = vpop.xlane.xlu0 %1108  ;;  %v1328_v27 = vsel %vm736_vm5, %v1233_v58, %v1327_v60 }
 0x1ea   :  { %v1241_v50 = vrot.slane %v1111_v24, %v3252_v56  ;;  %v1237_v39 = vrot.slane %v1109_v29, %v3253_v7 }
 0x1ec   :  { %v1242_v17 = vsel %vm591_vm0, %v1241_v50, %v1237_v39 }
 0x1ed   :  { %v1115_v14 = vpop.xlane.xlu1 %1114  ;;  %v1113_v5 = vpop.xlane.xlu0 %1112  ;;  %v1329_v36 = vsel %vm738_vm6, %v1242_v17, %v1328_v27 }
 0x1ee   :  { %v1250_v63 = vrot.slane %v1115_v14, %v3252_v56  ;;  %v1246_v43 = vrot.slane %v1113_v5, %v3253_v7 }
 0x1f0   :  { %v1251_v15 = vsel %vm591_vm0, %v1250_v63, %v1246_v43 }
 0x1f1   :  { %v1330_v0 = vsel %vm740_vm7, %v1251_v15, %v1329_v36  ;;  %v1119_v61 = vpop.xlane.xlu1 %1118  ;;  %v1117_v42 = vpop.xlane.xlu0 %1116 }
 0x1f2   :  { %1341 = vst.msk [vmem:[#allocation6 + $0x10] sm:$0xff] %vm751_vm8, %v1330_v0  ;;  %v1259_v62 = vrot.slane %v1119_v61, %v3252_v56  ;;  %v1255_v47 = vrot.slane %v1117_v42, %v3253_v7 }
 0x1f4   :  { %v1260_v41 = vsel %vm591_vm0, %v1259_v62, %v1255_v47 }
 0x1f5   :  { %v1123_v18 = vpop.xlane.xlu1 %1122  ;;  %v1121_v19 = vpop.xlane.xlu0 %1120 }
 0x1f6   :  { %v1268_v23 = vrot.slane %v1123_v18, %v3252_v56  ;;  %v1264_v9 = vrot.slane %v1121_v19, %v3253_v7 }
 0x1f8   :  { %v1269_v6 = vsel %vm591_vm0, %v1268_v23, %v1264_v9 }
 0x1f9   :  { %v1331_v38 = vsel %vm728_vm1, %v1269_v6, %v1260_v41  ;;  %v1127_v2 = vpop.xlane.xlu1 %1126  ;;  %v1125_v31 = vpop.xlane.xlu0 %1124 }
 0x1fa   :  { %v1277_v46 = vrot.slane %v1127_v2, %v3252_v56  ;;  %v1273_v22 = vrot.slane %v1125_v31, %v3253_v7 }
 0x1fc   :  { %v1278_v27 = vsel %vm591_vm0, %v1277_v46, %v1273_v22 }
 0x1fd   :  { %v1380_v16 = vpop.xlane.xlu1 %1379  ;;  %v1129_v21 = vpop.xlane.xlu0 %1128  ;;  %v1332_v47 = vsel %vm730_vm2, %v1278_v27, %v1331_v38 }
 0x1fe   :  { %v1478_v35 = vrot.slane %v1380_v16, %v3253_v7  ;;  %v1282_v60 = vrot.slane %v1129_v21, %v3253_v7 }
 0x201   :  { %v1384_v44 = vpop.xlane.xlu1 %1383  ;;  %v1382_v55 = vpop.xlane.xlu0 %1381 }
 0x202   :  { %v1482_v26 = vrot.slane %v1382_v55, %v3252_v56  ;;  %v1487_v10 = vrot.slane %v1384_v44, %v3253_v7 }
 0x204   :  { %v1483_v3 = vsel %vm591_vm0, %v1482_v26, %v1478_v35 }
 0x205   :  { %v2993_v45 = vpop.xlane.xlu1 %1411  ;;  %v1386_v37 = vpop.xlane.xlu0 %1385 }
 0x206   :  { %v1491_v54 = vrot.slane %v1386_v37, %v3252_v56 }
 0x208   :  { %v1492_v25 = vsel %vm591_vm0, %v1491_v54, %v1487_v10  ;;  %v1550_v10 = vrot.slane %v2993_v45, %v3253_v7 }
 0x209   :  { %v2999_v53 = vsel %vm728_vm1, %v1492_v25, %v1483_v3  ;;  %v3001_v11 = vpop.xlane.xlu1 %1415  ;;  %v3003_v57 = vpop.xlane.xlu0 %1413 }
 0x20a   :  { %v1554_v35 = vrot.slane %v3003_v57, %v3252_v56  ;;  %v1559_v57 = vrot.slane %v3001_v11, %v3253_v7 }
 0x20d   :  { %v1131_v13 = vpop.xlane.xlu1 %1130  ;;  %v3005_v4 = vpop.xlane.xlu0 %1417 }
 0x20e   :  { %v1286_v17 = vrot.slane %v1131_v13, %v3252_v56  ;;  %v1563_v54 = vrot.slane %v3005_v4, %v3252_v56 }
 0x210   :  { %v1287_v42 = vsel %vm591_vm0, %v1286_v17, %v1282_v60 }
 0x211   :  { %v3007_v28 = vpop.xlane.xlu1 %1389  ;;  %v3009_v20 = vpop.xlane.xlu0 %1387  ;;  %v1333_v18 = vsel %vm732_vm3, %v1287_v42, %v1332_v47 }
 0x212   :  { %v1500_v16 = vrot.slane %v3007_v28, %v3252_v56  ;;  %v1496_v38 = vrot.slane %v3009_v20, %v3253_v7 }
 0x214   :  { %v1501_v28 = vsel %vm591_vm0, %v1500_v16, %v1496_v38 }
 0x215   :  { %v3011_v59 = vpop.xlane.xlu1 %1421  ;;  %v3013_v51 = vpop.xlane.xlu0 %1419 }
 0x219   :  { %v1135_v1 = vpop.xlane.xlu1 %1134  ;;  %v1133_v52 = vpop.xlane.xlu0 %1132 }
 0x21a   :  { %v1295_v14 = vrot.slane %v1135_v1, %v3252_v56  ;;  %v1291_v5 = vrot.slane %v1133_v52, %v3253_v7 }
 0x21c   :  { %v1296_v62 = vsel %vm591_vm0, %v1295_v14, %v1291_v5 }
 0x21d   :  { %v3015_v30 = vpop.xlane.xlu1 %1393  ;;  %v3017_v33 = vpop.xlane.xlu0 %1391  ;;  %v1334_v6 = vsel %vm734_vm4, %v1296_v62, %v1333_v18 }
 0x21e   :  { %v1509_v25 = vrot.slane %v3015_v30, %v3252_v56  ;;  %v1505_v13 = vrot.slane %v3017_v33, %v3253_v7 }
 0x221   :  { %v3019_v48 = vpop.xlane.xlu1 %1425  ;;  %v3021_v34 = vpop.xlane.xlu0 %1423 }
 0x225   :  { %v1139_v32 = vpop.xlane.xlu1 %1138  ;;  %v1137_v24 = vpop.xlane.xlu0 %1136 }
 0x226   :  { %v1304_v63 = vrot.slane %v1139_v32, %v3252_v56  ;;  %v1300_v43 = vrot.slane %v1137_v24, %v3253_v7 }
 0x228   :  { %v1305_v41 = vsel %vm591_vm0, %v1304_v63, %v1300_v43 }
 0x229   :  { %v3023_v29 = vpop.xlane.xlu1 %1397  ;;  %v3025_v40 = vpop.xlane.xlu0 %1395  ;;  %v1335_v21 = vsel %vm736_vm5, %v1305_v41, %v1334_v6 }
 0x22a   :  { %v1518_v20 = vrot.slane %v3023_v29, %v3252_v56  ;;  %v1514_v45 = vrot.slane %v3025_v40, %v3253_v7 }
 0x22d   :  { %v3027_v8 = vpop.xlane.xlu1 %1429  ;;  %v3029_v50 = vpop.xlane.xlu0 %1427 }
 0x231   :  { %v1143_v39 = vpop.xlane.xlu1 %1142  ;;  %v1141_v12 = vpop.xlane.xlu0 %1140 }
 0x232   :  { %v1313_v36 = vrot.slane %v1143_v39, %v3252_v56  ;;  %v1309_v15 = vrot.slane %v1141_v12, %v3253_v7 }
 0x234   :  { %v1314_v19 = vsel %vm591_vm0, %v1313_v36, %v1309_v15 }
 0x235   :  { %v3033_v58 = vpop.xlane.xlu1 %1401  ;;  %v3035_v49 = vpop.xlane.xlu0 %1399  ;;  %v1336_v44 = vsel %vm738_vm6, %v1314_v19, %v1335_v21 }
 0x239   :  { %v3046_v0 = vpop.xlane.xlu1 %1433  ;;  %v3048_v61 = vpop.xlane.xlu0 %1431 }
 0x23d   :  { %v1147_v23 = vpop.xlane.xlu1 %1146  ;;  %v1145_v9 = vpop.xlane.xlu0 %1144 }
 0x23e   :  { %v1322_v2 = vrot.slane %v1147_v23, %v3252_v56  ;;  %v1318_v31 = vrot.slane %v1145_v9, %v3253_v7 }
 0x240   :  { %v1323_v55 = vsel %vm591_vm0, %v1322_v2, %v1318_v31 }
 0x241   :  { %v1337_v26 = vsel %vm740_vm7, %v1323_v55, %v1336_v44  ;;  %v1406_v3 = vpop.xlane.xlu1 %1405  ;;  %v1404_v37 = vpop.xlane.xlu0 %1403 }
 0x242   :  { %1342 = vst.msk [vmem:[#allocation6 + $0x18] sm:$0xff] %vm751_vm8, %v1337_v26 }
 0x243   :  { %1972 = shalt.err (!%p1969_p6)
}
 0x244   :  { %s1973_s23 = scalar_lea.hbm %s3182_s3, 512 }
 0x245   :  { %p1974_p7 = scmp.ne.s32.totalorder %s3182_s3, %s1973_s23  ;;  %p1977_p8 = scmp.lt.u32.totalorder %s1973_s23, %s3182_s3 }
 0x247   :  { %p1979_p9 = pnand %p1977_p8, %p1974_p7 }
 0x249   :  { %1982 = shalt.err (!%p1979_p9)
}
 0x24a   :  { %1661 = dma.vmem_to_hbm [thread:$0]  %s3066_s19, 512, %s3182_s3, [#allocation7], %s2012_s25, %s2012_s25, %s2013_s26   ;;  %v1572_v11 = vrot.slane %v3011_v59, %v3252_v56  ;;  %v1568_v4 = vrot.slane %v3013_v51, %v3253_v7  ;;  %v1527_v1 = vrot.slane %v3033_v58, %v3252_v56  ;;  %v1523_v52 = vrot.slane %v3035_v49, %v3253_v7  ;;  %v1438_v24 = vpop.xlane.xlu1 %1437  ;;  %v1436_v29 = vpop.xlane.xlu0 %1435 }
 0x24b   :  { %v1555_v30 = vsel %vm591_vm0, %v1554_v35, %v1550_v10  ;;  %v1536_v33 = vrot.slane %v1406_v3, %v3252_v56  ;;  %v1532_v32 = vrot.slane %v1404_v37, %v3253_v7  ;;  %v1564_v40 = vsel %vm591_vm0, %v1563_v54, %v1559_v57  ;;  %s2018_s3 = smov [#allocation8]  }
 0x24c   :  { %v1510_v59 = vsel %vm591_vm0, %v1509_v25, %v1505_v13  ;;  %v1581_v51 = vrot.slane %v3019_v48, %v3252_v56  ;;  %v1577_v39 = vrot.slane %v3021_v34, %v3253_v7  ;;  %v1620_v12 = vsel %vm730_vm2, %v1501_v28, %v2999_v53  ;;  %s1667_s5 = sshll.u32 %s2018_s3, 4  ;;  %s1668_s5 = int_to_ptr.vmem [resolvable:$true] %s1667_s5 }
 0x24d   :  { %v1519_v46 = vsel %vm591_vm0, %v1518_v20, %v1514_v45  ;;  %v1590_v22 = vrot.slane %v3027_v8, %v3252_v56  ;;  %v1586_v58 = vrot.slane %v3029_v50, %v3253_v7  ;;  %v1573_v49 = vsel %vm591_vm0, %v1572_v11, %v1568_v4  ;;  %s1983_s1 = scalar_lea.vmem %s1668_s5, 512  ;;  %p1988_p11 = scmp.lt.s32.totalorder %s1668_s5, %s1668_s5 }
 0x24e   :  { %v1528_v17 = vsel %vm591_vm0, %v1527_v1, %v1523_v52  ;;  %v1599_v48 = vrot.slane %v3046_v0, %v3252_v56  ;;  %v1595_v34 = vrot.slane %v3048_v61, %v3253_v7  ;;  %v1621_v53 = vsel %vm732_vm3, %v1510_v59, %v1620_v12  ;;  %v1410_v60 = vpop.xlane.xlu1 %1409  ;;  %v1408_v50 = vpop.xlane.xlu0 %1407  ;;  %p1984_p10 = scmp.ne.s32.totalorder %s1668_s5, %s1983_s1  ;;  %p1989_p12 = scmp.lt.s32.totalorder %s1983_s1, %s1983_s1 }
 0x24f   :  { %v1537_v14 = vsel %vm591_vm0, %v1536_v33, %v1532_v32  ;;  %v1608_v5 = vrot.slane %v1438_v24, %v3252_v56  ;;  %v1604_v8 = vrot.slane %v1436_v29, %v3253_v7  ;;  %v1582_v63 = vsel %vm591_vm0, %v1581_v51, %v1577_v39 }
 0x250   :  { %v1622_v43 = vsel %vm734_vm4, %v1519_v46, %v1621_v53  ;;  %v1545_v27 = vrot.slane %v1410_v60, %v3252_v56  ;;  %v1541_v36 = vrot.slane %v1408_v50, %v3253_v7  ;;  %v1626_v15 = vsel %vm728_vm1, %v1564_v40, %v1555_v30  ;;  %p1990_p13 = por %p1989_p12, %p1988_p11 }
 0x251   :  { %v1591_v0 = vsel %vm591_vm0, %v1590_v22, %v1586_v58  ;;  %v1623_v61 = vsel %vm736_vm5, %v1528_v17, %v1622_v43  ;;  %v1627_v42 = vsel %vm730_vm2, %v1573_v49, %v1626_v15  ;;  %v1600_v62 = vsel %vm591_vm0, %v1599_v48, %v1595_v34 }
 0x252   :  { %v1624_v47 = vsel %vm738_vm6, %v1537_v14, %v1623_v61  ;;  %v1546_v41 = vsel %vm591_vm0, %v1545_v27, %v1541_v36  ;;  %v1628_v18 = vsel %vm732_vm3, %v1582_v63, %v1627_v42  ;;  %v1609_v19 = vsel %vm591_vm0, %v1608_v5, %v1604_v8  ;;  %v1442_v9 = vpop.xlane.xlu1 %1441  ;;  %v1440_v6 = vpop.xlane.xlu0 %1439  ;;  %p1991_p0 = pnand %p1990_p13, %p1984_p10 }
 0x253   :  { %v1625_v23 = vsel %vm740_vm7, %v1546_v41, %v1624_v47  ;;  %v1629_v2 = vsel %vm734_vm4, %v1591_v0, %v1628_v18  ;;  %v1617_v31 = vrot.slane %v1442_v9, %v3252_v56  ;;  %v1613_v16 = vrot.slane %v1440_v6, %v3253_v7 }
 0x254   :  { %1636 = vst.msk [vmem:[#allocation8 + $0x10] sm:$0xff] %vm751_vm8, %v1625_v23  ;;  %v1630_v38 = vsel %vm736_vm5, %v1600_v62, %v1629_v2 }
 0x255   :  { %v1631_v21 = vsel %vm738_vm6, %v1609_v19, %v1630_v38  ;;  %v1618_v44 = vsel %vm591_vm0, %v1617_v31, %v1613_v16 }
 0x256   :  { %v1632_v55 = vsel %vm740_vm7, %v1618_v44, %v1631_v21 }
 0x257   :  { %1637 = vst.msk [vmem:[#allocation8 + $0x18] sm:$0xff] %vm751_vm8, %v1632_v55 }
 0x258   :  { %1994 = shalt.err (!%p1991_p0)
}
 0x259   :  { %s1995_s8 = scalar_lea.hbm %s3183_s4, 512 }
 0x25a   :  { %p1996_p1 = scmp.ne.s32.totalorder %s3183_s4, %s1995_s8  ;;  %p1999_p2 = scmp.lt.u32.totalorder %s1995_s8, %s3183_s4 }
 0x25c   :  { %p2001_p3 = pnand %p1999_p2, %p1996_p1 }
 0x25e   :  { %2004 = shalt.err (!%p2001_p3)
}
 0x25f   :  { %1673 = dma.vmem_to_hbm [thread:$0]  %s1668_s5, 512, %s3183_s4, [#allocation7], %s2012_s25, %s2012_s25, %s2013_s26  }
 0x260   :  { %2007 = dma.done.wait [#allocation4], 2048  }
 0x261   :  { %2008 = vsyncadd [#allocation4], 4294965248 }
 0x262   :  { %2009 = dma.done.wait [#allocation7], 1024  }
 0x263   :  { %2010 = vsyncadd [#allocation7], 4294966272 }
 0x264   :  { %1683 = vsyncpa [#allocation3], 1 }
 0x265   :  { %1684 = vsyncpa [#allocation4], 1 }
 0x266   :  { %1685 = vsyncpa [#allocation7], 1 }

</bundles_post_ra>
